<compile_context>
chip_gen: v7x
topology: tpu7x:2x2x1
jax: 0.10.0
libtpu: 0.0.40
codegen_flags: <defaults>
</compile_context>

<pallas_src>
import math
import jax
import jax.numpy as jnp
from jax.experimental import pallas as pl
from jax.experimental.pallas import tpu as pltpu


# ---------------------------------------------------------------------------
# Pallas kernel: one block of B batch elements per grid step.
# ---------------------------------------------------------------------------
def _point_to_sparse_kernel(x_ref, m_ref, w1_ref, b1_ref, w2_ref, b2_ref,
                            o_ref):
    B, cin, SP = x_ref.shape           # point axis flattened onto lanes
    S = m_ref.shape[1]
    P = SP // S
    mid = w1_ref.shape[2]
    cout = w2_ref.shape[2]

    x = x_ref[...]                     # [B, cin, SP] f32
    w1 = w1_ref[...]                   # [3, cin, mid, 1]  (BN1 scale folded)
    w2 = w2_ref[...]                   # [3, mid, cout]    (BN2 scale folded)

    # ---- conv1: per-tap / per-channel broadcast-FMA on the VPU --------------
    # h[b, m, p] = sum_{t,c} w1[t, c, m] * x[b, c, p + t]   (valid for p%P <= P-3)
    x_ch = [x[:, c, :] for c in range(cin)]                 # each [B, SP]
    h = jnp.zeros((B, mid, SP), jnp.float32)
    for t in range(3):
        for c in range(cin):
            xc = x_ch[c] if t == 0 else jnp.roll(x_ch[c], -t, axis=1)
            h = h + xc[:, None, :] * w1[t, c][None]         # [B, mid, SP]
    h = h + b1_ref[...][None]                               # [1, mid, 1]
    h = h * jax.nn.sigmoid(h)                               # SiLU

    # ---- conv2: one transpose to point-major, then 3 lane-dense MXU dots ----
    ht = jnp.swapaxes(h, 1, 2)                              # [B, SP, mid]
    g = jnp.zeros((B * SP, cout), jnp.float32)
    for t in range(3):
        hs = ht if t == 0 else jnp.roll(ht, -t, axis=1)     # hs[:, p, :] = ht[:, p+t, :]
        g = g + jnp.dot(hs.reshape(B * SP, mid), w2[t],
                        preferred_element_type=jnp.float32)  # M=B*SP, K=mid, N=cout
    g = g + b2_ref[...]                                     # [1, cout]
    g = g * jax.nn.sigmoid(g)                               # SiLU
    g = g.reshape(B * S, P, cout)

    # ---- mask the P-4..P-1 tail (taps crossed a stroke boundary), then max --
    pos = jax.lax.broadcasted_iota(jnp.int32, (P, cout), 0)
    valid = pos < (P - 4)                                   # [P, cout]
    g = jnp.where(valid[None], g, jnp.float32(-1e30))
    feat = jnp.max(g, axis=1)                               # [B*S, cout]

    # ---- stroke mask + lane-dense store (cout on lanes) ---------------------
    m = m_ref[...].reshape(B * S, 1)                        # [B*S, 1]
    o_ref[...] = (feat * m).reshape(B, S, cout)


# ---------------------------------------------------------------------------
# Wrapper
# ---------------------------------------------------------------------------
def point_to_sparse(xy, mask, w1, b1, w2, b2, *, batch_block=None):
    bs, S, P, cin = xy.shape
    assert P >= 5, "need >= 5 points per stroke for two valid (1,3) convs"
    mid, cout = w1.shape[2], w2.shape[2]
    SP = S * P

    if batch_block is None:
        # Fold batch elements into each grid step, but keep >=2 "parallel"
        # steps when possible so both v7x TensorCores get work.
        batch_block = bs if bs <= 1 else pl.cdiv(bs, 2)
    if bs % batch_block != 0:
        batch_block = 1
    B = batch_block
    n_steps = bs // B

    # Lane-dense input layout: channels-first, point axis flattened onto lanes.
    x_cl = jnp.transpose(xy, (0, 3, 1, 2)).reshape(bs, cin, SP)
    # Stroke-level mask reduced outside the kernel (P x fewer DMA bytes).
    stroke_mask = jnp.max(mask, axis=-1)[..., None]          # [bs, S, 1]

    out = pl.pallas_call(
        _point_to_sparse_kernel,
        out_shape=jax.ShapeDtypeStruct((bs, S, cout), jnp.float32),
        grid=(n_steps,),
        in_specs=[
            pl.BlockSpec((B, cin, SP), lambda i: (i, 0, 0)),
            pl.BlockSpec((B, S, 1), lambda i: (i, 0, 0)),
            pl.BlockSpec((3, cin, mid, 1), lambda i: (0, 0, 0, 0)),
            pl.BlockSpec((mid, 1), lambda i: (0, 0)),
            pl.BlockSpec((3, mid, cout), lambda i: (0, 0, 0)),
            pl.BlockSpec((1, cout), lambda i: (0, 0)),
        ],
        out_specs=pl.BlockSpec((B, S, cout), lambda i: (i, 0, 0)),
        compiler_params=pltpu.CompilerParams(
            dimension_semantics=("parallel",)),
    )(x_cl, stroke_mask, w1, b1, w2, b2)

    # PyTorch-matching layout [bs, cout, S]; transpose stays in XLA so the
    # kernel's store is lane-dense.
    return jnp.transpose(out, (0, 2, 1))


# ---------------------------------------------------------------------------
# Deterministic parameter construction (synthetic; mirrors __init__ shapes).
# BN (eval-mode) scale is folded into the conv weights; only bias stays.
# ---------------------------------------------------------------------------
def make_params(key, point_dim, sparse_out, eps=1e-5):
    mid = int(math.sqrt(point_dim * sparse_out))
    keys = jax.random.split(key, 12)

    # Conv1: PyTorch weight [mid, point_dim, 1, 3] (squeezed), bias [mid]
    w1 = 0.3 * jax.random.normal(keys[0], (mid, point_dim, 3), jnp.float32)
    b1 = 0.1 * jax.random.normal(keys[1], (mid,), jnp.float32)
    g1 = 1.0 + 0.1 * jax.random.normal(keys[2], (mid,), jnp.float32)
    be1 = 0.1 * jax.random.normal(keys[3], (mid,), jnp.float32)
    mu1 = 0.05 * jax.random.normal(keys[4], (mid,), jnp.float32)
    v1 = 1.0 + 0.1 * jax.random.uniform(keys[5], (mid,), jnp.float32)

    # Conv2: PyTorch weight [sparse_out, mid, 1, 3] (squeezed), bias [sparse_out]
    w2 = 0.3 * jax.random.normal(keys[6], (sparse_out, mid, 3), jnp.float32)
    b2 = 0.1 * jax.random.normal(keys[7], (sparse_out,), jnp.float32)
    g2 = 1.0 + 0.1 * jax.random.normal(keys[8], (sparse_out,), jnp.float32)
    be2 = 0.1 * jax.random.normal(keys[9], (sparse_out,), jnp.float32)
    mu2 = 0.05 * jax.random.normal(keys[10], (sparse_out,), jnp.float32)
    v2 = 1.0 + 0.1 * jax.random.uniform(keys[11], (sparse_out,), jnp.float32)

    s1 = g1 / jnp.sqrt(v1 + eps)
    s2 = g2 / jnp.sqrt(v2 + eps)

    # Fold BN scale into weights, rearrange [out, in, k] -> [k, in, out(, 1)].
    w1_eff = jnp.transpose(w1 * s1[:, None, None], (2, 1, 0))[..., None]   # [3, cin, mid, 1]
    w2_eff = jnp.transpose(w2 * s2[:, None, None], (2, 1, 0))              # [3, mid, cout]
    b1_eff = ((b1 - mu1) * s1 + be1)[:, None]                              # [mid, 1]
    b2_eff = ((b2 - mu2) * s2 + be2)[None, :]                              # [1, cout]
    return w1_eff, b1_eff, w2_eff, b2_eff


# ---------------------------------------------------------------------------
# Pure-JAX reference (independent formulation, for correctness check)
# ---------------------------------------------------------------------------
def ref_forward(xy, mask, w1, b1, w2, b2):
    bs, S, P, cin = xy.shape
    L1, L2 = P - 2, P - 4
    mid, cout = w1.shape[2], w2.shape[2]
    w1f = w1[..., 0].reshape(3 * cin, mid)      # (tap, channel) order
    w2f = w2.reshape(3 * mid, cout)
    hi = jax.lax.Precision.HIGHEST

    xc = jnp.concatenate(
        [xy[:, :, 0:L1], xy[:, :, 1:L1 + 1], xy[:, :, 2:L1 + 2]], axis=-1)
    h = jnp.einsum('bslc,cm->bslm', xc, w1f, precision=hi) + b1[:, 0]
    h = jax.nn.silu(h)
    hc = jnp.concatenate(
        [h[:, :, 0:L2], h[:, :, 1:L2 + 1], h[:, :, 2:L2 + 2]], axis=-1)
    g = jnp.einsum('bslc,cm->bslm', hc, w2f, precision=hi) + b2[0]
    g = jax.nn.silu(g)
    feat = g.max(axis=2)                                    # [bs, S, cout]
    out = feat * mask.max(axis=2)[..., None]
    return jnp.transpose(out, (0, 2, 1))                    # [bs, cout, S]


if __name__ == "__main__":
    bs, n_stk, n_stk_pnt = 4, 8, 16
    point_dim, sparse_out = 2, 32

    key = jax.random.PRNGKey(0)
    k_xy, k_mask, k_par = jax.random.split(key, 3)

    xy = jax.random.normal(k_xy, (bs, n_stk, n_stk_pnt, point_dim), jnp.float32)
    mask = (jax.random.uniform(k_mask, (bs, n_stk, n_stk_pnt)) > 0.3
            ).astype(jnp.float32)

    w1, b1, w2, b2 = make_params(k_par, point_dim, sparse_out)

    out = point_to_sparse(xy, mask, w1, b1, w2, b2)
    out = jax.block_until_ready(out)

    ref = ref_forward(xy, mask, w1, b1, w2, b2)
    assert out.shape == (bs, sparse_out, n_stk), out.shape
    if not jnp.allclose(out, ref, atol=1e-3, rtol=1e-3):
        err = float(jnp.max(jnp.abs(out - ref)))
        raise AssertionError(
            f"Pallas kernel output mismatch vs reference (max abs err {err})")
    print("KERNEL_OK")
</pallas_src>

<mosaic_0001>
module attributes {stable_mosaic.version = 11 : i64} {
  func.func @_point_to_sparse_kernel(%arg0: i32, %arg1: memref<2x2x128xf32, #tpu.memory_space<vmem>>, %arg2: memref<2x8x1xf32, #tpu.memory_space<vmem>>, %arg3: memref<3x2x8x1xf32, #tpu.memory_space<vmem>>, %arg4: memref<8x1xf32, #tpu.memory_space<vmem>>, %arg5: memref<3x8x32xf32, #tpu.memory_space<vmem>>, %arg6: memref<1x32xf32, #tpu.memory_space<vmem>>, %arg7: memref<2x8x32xf32, #tpu.memory_space<vmem>>) attributes {dimension_semantics = [#tpu.dimension_semantics<parallel>], iteration_bounds = array<i64: 2>, scalar_prefetch = 0 : i64, scratch_operands = 0 : i64, tpu.core_type = #tpu.core_type<tc>, window_params = [{transform_indices = @transform_0, window_bounds = array<i64: 2, 2, 128>}, {transform_indices = @transform_1, window_bounds = array<i64: 2, 8, 1>}, {pipeline_mode = #tpu.pipeline_mode<synchronous>, transform_indices = @transform_2, window_bounds = array<i64: 3, 2, 8, 1>}, {pipeline_mode = #tpu.pipeline_mode<synchronous>, transform_indices = @transform_3, window_bounds = array<i64: 8, 1>}, {pipeline_mode = #tpu.pipeline_mode<synchronous>, transform_indices = @transform_4, window_bounds = array<i64: 3, 8, 32>}, {pipeline_mode = #tpu.pipeline_mode<synchronous>, transform_indices = @transform_5, window_bounds = array<i64: 1, 32>}, {transform_indices = @transform_6, window_bounds = array<i64: 2, 8, 32>}]} {
    %c0 = arith.constant 0 : index
    %c0_0 = arith.constant 0 : index
    %c0_1 = arith.constant 0 : index
    %0 = vector.load %arg1[%c0, %c0_0, %c0_1] : memref<2x2x128xf32, #tpu.memory_space<vmem>>, vector<2x2x128xf32>
    %c0_2 = arith.constant 0 : index
    %c0_3 = arith.constant 0 : index
    %c0_4 = arith.constant 0 : index
    %c0_5 = arith.constant 0 : index
    %1 = vector.load %arg3[%c0_2, %c0_3, %c0_4, %c0_5] : memref<3x2x8x1xf32, #tpu.memory_space<vmem>>, vector<3x2x8x1xf32>
    %c0_6 = arith.constant 0 : index
    %c0_7 = arith.constant 0 : index
    %c0_8 = arith.constant 0 : index
    %2 = vector.load %arg5[%c0_6, %c0_7, %c0_8] : memref<3x8x32xf32, #tpu.memory_space<vmem>>, vector<3x8x32xf32>
    %3 = vector.extract_strided_slice %0 {offsets = [0, 0, 0], sizes = [2, 1, 128], strides = [1, 1, 1]} : vector<2x2x128xf32> to vector<2x1x128xf32>
    %4 = vector.shape_cast %3 : vector<2x1x128xf32> to vector<2x128xf32>
    %5 = vector.extract_strided_slice %0 {offsets = [0, 1, 0], sizes = [2, 1, 128], strides = [1, 1, 1]} : vector<2x2x128xf32> to vector<2x1x128xf32>
    %6 = vector.shape_cast %5 : vector<2x1x128xf32> to vector<2x128xf32>
    %cst = arith.constant 0.000000e+00 : f32
    %7 = vector.broadcast %cst : f32 to vector<2x8x128xf32>
    %8 = vector.shape_cast %4 : vector<2x128xf32> to vector<2x1x128xf32>
    %9 = vector.extract_strided_slice %1 {offsets = [0, 0, 0, 0], sizes = [1, 1, 8, 1], strides = [1, 1, 1, 1]} : vector<3x2x8x1xf32> to vector<1x1x8x1xf32>
    %10 = vector.shape_cast %9 : vector<1x1x8x1xf32> to vector<8x1xf32>
    %11 = vector.shape_cast %10 : vector<8x1xf32> to vector<1x8x1xf32>
    %12 = vector.broadcast %8 : vector<2x1x128xf32> to vector<2x8x128xf32>
    %13 = vector.broadcast %11 : vector<1x8x1xf32> to vector<2x8x128xf32>
    %14 = arith.mulf %12, %13 : vector<2x8x128xf32>
    %15 = arith.addf %7, %14 : vector<2x8x128xf32>
    %16 = vector.shape_cast %6 : vector<2x128xf32> to vector<2x1x128xf32>
    %17 = vector.extract_strided_slice %1 {offsets = [0, 1, 0, 0], sizes = [1, 1, 8, 1], strides = [1, 1, 1, 1]} : vector<3x2x8x1xf32> to vector<1x1x8x1xf32>
    %18 = vector.shape_cast %17 : vector<1x1x8x1xf32> to vector<8x1xf32>
    %19 = vector.shape_cast %18 : vector<8x1xf32> to vector<1x8x1xf32>
    %20 = vector.broadcast %16 : vector<2x1x128xf32> to vector<2x8x128xf32>
    %21 = vector.broadcast %19 : vector<1x8x1xf32> to vector<2x8x128xf32>
    %22 = arith.mulf %20, %21 : vector<2x8x128xf32>
    %23 = arith.addf %15, %22 : vector<2x8x128xf32>
    %24 = vector.extract_strided_slice %4 {offsets = [0, 1], sizes = [2, 127], strides = [1, 1]} : vector<2x128xf32> to vector<2x127xf32>
    %25 = vector.extract_strided_slice %4 {offsets = [0, 0], sizes = [2, 1], strides = [1, 1]} : vector<2x128xf32> to vector<2x1xf32>
    %26 = tpu.concatenate %24, %25 in 1 : vector<2x127xf32>, vector<2x1xf32> -> vector<2x128xf32>
    %27 = vector.shape_cast %26 : vector<2x128xf32> to vector<2x1x128xf32>
    %28 = vector.extract_strided_slice %1 {offsets = [1, 0, 0, 0], sizes = [1, 1, 8, 1], strides = [1, 1, 1, 1]} : vector<3x2x8x1xf32> to vector<1x1x8x1xf32>
    %29 = vector.shape_cast %28 : vector<1x1x8x1xf32> to vector<8x1xf32>
    %30 = vector.shape_cast %29 : vector<8x1xf32> to vector<1x8x1xf32>
    %31 = vector.broadcast %27 : vector<2x1x128xf32> to vector<2x8x128xf32>
    %32 = vector.broadcast %30 : vector<1x8x1xf32> to vector<2x8x128xf32>
    %33 = arith.mulf %31, %32 : vector<2x8x128xf32>
    %34 = arith.addf %23, %33 : vector<2x8x128xf32>
    %35 = vector.extract_strided_slice %6 {offsets = [0, 1], sizes = [2, 127], strides = [1, 1]} : vector<2x128xf32> to vector<2x127xf32>
    %36 = vector.extract_strided_slice %6 {offsets = [0, 0], sizes = [2, 1], strides = [1, 1]} : vector<2x128xf32> to vector<2x1xf32>
    %37 = tpu.concatenate %35, %36 in 1 : vector<2x127xf32>, vector<2x1xf32> -> vector<2x128xf32>
    %38 = vector.shape_cast %37 : vector<2x128xf32> to vector<2x1x128xf32>
    %39 = vector.extract_strided_slice %1 {offsets = [1, 1, 0, 0], sizes = [1, 1, 8, 1], strides = [1, 1, 1, 1]} : vector<3x2x8x1xf32> to vector<1x1x8x1xf32>
    %40 = vector.shape_cast %39 : vector<1x1x8x1xf32> to vector<8x1xf32>
    %41 = vector.shape_cast %40 : vector<8x1xf32> to vector<1x8x1xf32>
    %42 = vector.broadcast %38 : vector<2x1x128xf32> to vector<2x8x128xf32>
    %43 = vector.broadcast %41 : vector<1x8x1xf32> to vector<2x8x128xf32>
    %44 = arith.mulf %42, %43 : vector<2x8x128xf32>
    %45 = arith.addf %34, %44 : vector<2x8x128xf32>
    %46 = vector.extract_strided_slice %4 {offsets = [0, 2], sizes = [2, 126], strides = [1, 1]} : vector<2x128xf32> to vector<2x126xf32>
    %47 = vector.extract_strided_slice %4 {offsets = [0, 0], sizes = [2, 2], strides = [1, 1]} : vector<2x128xf32> to vector<2x2xf32>
    %48 = tpu.concatenate %46, %47 in 1 : vector<2x126xf32>, vector<2x2xf32> -> vector<2x128xf32>
    %49 = vector.shape_cast %48 : vector<2x128xf32> to vector<2x1x128xf32>
    %50 = vector.extract_strided_slice %1 {offsets = [2, 0, 0, 0], sizes = [1, 1, 8, 1], strides = [1, 1, 1, 1]} : vector<3x2x8x1xf32> to vector<1x1x8x1xf32>
    %51 = vector.shape_cast %50 : vector<1x1x8x1xf32> to vector<8x1xf32>
    %52 = vector.shape_cast %51 : vector<8x1xf32> to vector<1x8x1xf32>
    %53 = vector.broadcast %49 : vector<2x1x128xf32> to vector<2x8x128xf32>
    %54 = vector.broadcast %52 : vector<1x8x1xf32> to vector<2x8x128xf32>
    %55 = arith.mulf %53, %54 : vector<2x8x128xf32>
    %56 = arith.addf %45, %55 : vector<2x8x128xf32>
    %57 = vector.extract_strided_slice %6 {offsets = [0, 2], sizes = [2, 126], strides = [1, 1]} : vector<2x128xf32> to vector<2x126xf32>
    %58 = vector.extract_strided_slice %6 {offsets = [0, 0], sizes = [2, 2], strides = [1, 1]} : vector<2x128xf32> to vector<2x2xf32>
    %59 = tpu.concatenate %57, %58 in 1 : vector<2x126xf32>, vector<2x2xf32> -> vector<2x128xf32>
    %60 = vector.shape_cast %59 : vector<2x128xf32> to vector<2x1x128xf32>
    %61 = vector.extract_strided_slice %1 {offsets = [2, 1, 0, 0], sizes = [1, 1, 8, 1], strides = [1, 1, 1, 1]} : vector<3x2x8x1xf32> to vector<1x1x8x1xf32>
    %62 = vector.shape_cast %61 : vector<1x1x8x1xf32> to vector<8x1xf32>
    %63 = vector.shape_cast %62 : vector<8x1xf32> to vector<1x8x1xf32>
    %64 = vector.broadcast %60 : vector<2x1x128xf32> to vector<2x8x128xf32>
    %65 = vector.broadcast %63 : vector<1x8x1xf32> to vector<2x8x128xf32>
    %66 = arith.mulf %64, %65 : vector<2x8x128xf32>
    %67 = arith.addf %56, %66 : vector<2x8x128xf32>
    %c0_9 = arith.constant 0 : index
    %c0_10 = arith.constant 0 : index
    %68 = vector.load %arg4[%c0_9, %c0_10] : memref<8x1xf32, #tpu.memory_space<vmem>>, vector<8x1xf32>
    %69 = vector.shape_cast %68 : vector<8x1xf32> to vector<1x8x1xf32>
    %70 = vector.broadcast %69 : vector<1x8x1xf32> to vector<2x8x128xf32>
    %71 = arith.addf %67, %70 : vector<2x8x128xf32>
    %72 = arith.negf %71 : vector<2x8x128xf32>
    %73 = math.exp %72 : vector<2x8x128xf32>
    %cst_11 = arith.constant 1.000000e+00 : f32
    %74 = vector.broadcast %cst_11 : f32 to vector<2x8x128xf32>
    %75 = arith.addf %74, %73 : vector<2x8x128xf32>
    %76 = arith.divf %74, %75 : vector<2x8x128xf32>
    %77 = arith.mulf %71, %76 : vector<2x8x128xf32>
    %78 = tpu.transpose %77, [0, 2, 1] : vector<2x8x128xf32> -> vector<2x128x8xf32>
    %cst_12 = arith.constant 0.000000e+00 : f32
    %79 = vector.broadcast %cst_12 : f32 to vector<256x32xf32>
    %80 = vector.shape_cast %78 : vector<2x128x8xf32> to vector<256x8xf32>
    %81 = vector.extract_strided_slice %2 {offsets = [0, 0, 0], sizes = [1, 8, 32], strides = [1, 1, 1]} : vector<3x8x32xf32> to vector<1x8x32xf32>
    %82 = vector.shape_cast %81 : vector<1x8x32xf32> to vector<8x32xf32>
    %cst_13 = arith.constant dense<0.000000e+00> : vector<256x32xf32>
    %83 = tpu.matmul %80, %82, %cst_13 {dimension_numbers = #tpu.dot_dimension_numbers<[1], [0], [0], [1], [0, 0, 1, 1], [], []>} : vector<256x8xf32>, vector<8x32xf32>, vector<256x32xf32> -> vector<256x32xf32>
    %84 = arith.addf %79, %83 : vector<256x32xf32>
    %85 = vector.extract_strided_slice %78 {offsets = [0, 1, 0], sizes = [2, 127, 8], strides = [1, 1, 1]} : vector<2x128x8xf32> to vector<2x127x8xf32>
    %86 = vector.extract_strided_slice %78 {offsets = [0, 0, 0], sizes = [2, 1, 8], strides = [1, 1, 1]} : vector<2x128x8xf32> to vector<2x1x8xf32>
    %87 = tpu.concatenate %85, %86 in 1 : vector<2x127x8xf32>, vector<2x1x8xf32> -> vector<2x128x8xf32>
    %88 = vector.shape_cast %87 : vector<2x128x8xf32> to vector<256x8xf32>
    %89 = vector.extract_strided_slice %2 {offsets = [1, 0, 0], sizes = [1, 8, 32], strides = [1, 1, 1]} : vector<3x8x32xf32> to vector<1x8x32xf32>
    %90 = vector.shape_cast %89 : vector<1x8x32xf32> to vector<8x32xf32>
    %cst_14 = arith.constant dense<0.000000e+00> : vector<256x32xf32>
    %91 = tpu.matmul %88, %90, %cst_14 {dimension_numbers = #tpu.dot_dimension_numbers<[1], [0], [0], [1], [0, 0, 1, 1], [], []>} : vector<256x8xf32>, vector<8x32xf32>, vector<256x32xf32> -> vector<256x32xf32>
    %92 = arith.addf %84, %91 : vector<256x32xf32>
    %93 = vector.extract_strided_slice %78 {offsets = [0, 2, 0], sizes = [2, 126, 8], strides = [1, 1, 1]} : vector<2x128x8xf32> to vector<2x126x8xf32>
    %94 = vector.extract_strided_slice %78 {offsets = [0, 0, 0], sizes = [2, 2, 8], strides = [1, 1, 1]} : vector<2x128x8xf32> to vector<2x2x8xf32>
    %95 = tpu.concatenate %93, %94 in 1 : vector<2x126x8xf32>, vector<2x2x8xf32> -> vector<2x128x8xf32>
    %96 = vector.shape_cast %95 : vector<2x128x8xf32> to vector<256x8xf32>
    %97 = vector.extract_strided_slice %2 {offsets = [2, 0, 0], sizes = [1, 8, 32], strides = [1, 1, 1]} : vector<3x8x32xf32> to vector<1x8x32xf32>
    %98 = vector.shape_cast %97 : vector<1x8x32xf32> to vector<8x32xf32>
    %cst_15 = arith.constant dense<0.000000e+00> : vector<256x32xf32>
    %99 = tpu.matmul %96, %98, %cst_15 {dimension_numbers = #tpu.dot_dimension_numbers<[1], [0], [0], [1], [0, 0, 1, 1], [], []>} : vector<256x8xf32>, vector<8x32xf32>, vector<256x32xf32> -> vector<256x32xf32>
    %100 = arith.addf %92, %99 : vector<256x32xf32>
    %c0_16 = arith.constant 0 : index
    %c0_17 = arith.constant 0 : index
    %101 = vector.load %arg6[%c0_16, %c0_17] : memref<1x32xf32, #tpu.memory_space<vmem>>, vector<1x32xf32>
    %102 = vector.broadcast %101 : vector<1x32xf32> to vector<256x32xf32>
    %103 = arith.addf %100, %102 : vector<256x32xf32>
    %104 = arith.negf %103 : vector<256x32xf32>
    %105 = math.exp %104 : vector<256x32xf32>
    %cst_18 = arith.constant 1.000000e+00 : f32
    %106 = vector.broadcast %cst_18 : f32 to vector<256x32xf32>
    %107 = arith.addf %106, %105 : vector<256x32xf32>
    %108 = arith.divf %106, %107 : vector<256x32xf32>
    %109 = arith.mulf %103, %108 : vector<256x32xf32>
    %110 = vector.shape_cast %109 : vector<256x32xf32> to vector<16x16x32xf32>
    %111 = tpu.iota {dimensions = array<i32: 0>} : vector<16x32xi32>
    %c12_i32 = arith.constant 12 : i32
    %112 = vector.broadcast %c12_i32 : i32 to vector<16x32xi32>
    %113 = arith.cmpi slt, %111, %112 : vector<16x32xi32>
    %114 = vector.shape_cast %113 : vector<16x32xi1> to vector<1x16x32xi1>
    %cst_19 = arith.constant -1.000000e+30 : f32
    %115 = vector.shape_cast %114 : vector<1x16x32xi1> to vector<1x16x32xi1>
    %116 = vector.broadcast %115 : vector<1x16x32xi1> to vector<16x16x32xi1>
    %117 = vector.broadcast %cst_19 : f32 to vector<16x16x32xf32>
    %118 = arith.select %116, %110, %117 : vector<16x16x32xi1>, vector<16x16x32xf32>
    %cst_20 = arith.constant dense<0xFF800000> : vector<16x32xf32>
    %119 = vector.multi_reduction <maximumf>, %118, %cst_20 [1] : vector<16x16x32xf32> to vector<16x32xf32>
    %c0_21 = arith.constant 0 : index
    %c0_22 = arith.constant 0 : index
    %c0_23 = arith.constant 0 : index
    %120 = vector.load %arg2[%c0_21, %c0_22, %c0_23] : memref<2x8x1xf32, #tpu.memory_space<vmem>>, vector<2x8x1xf32>
    %121 = vector.shape_cast %120 : vector<2x8x1xf32> to vector<16x1xf32>
    %122 = vector.broadcast %121 : vector<16x1xf32> to vector<16x32xf32>
    %123 = arith.mulf %119, %122 : vector<16x32xf32>
    %124 = vector.shape_cast %123 : vector<16x32xf32> to vector<2x8x32xf32>
    %c0_24 = arith.constant 0 : index
    %c0_25 = arith.constant 0 : index
    %c0_26 = arith.constant 0 : index
    %125 = vector.load %arg7[%c0_24, %c0_25, %c0_26] : memref<2x8x32xf32, #tpu.memory_space<vmem>>, vector<2x8x32xf32>
    tpu.vector_store %arg7[%c0_24, %c0_25, %c0_26], %124 {strides = array<i32>} : memref<2x8x32xf32, #tpu.memory_space<vmem>>, vector<2x8x32xf32>,
    return
  }
  func.func @transform_0(%arg0: i32) -> (i32, i32, i32) {
    %c0_i32 = arith.constant 0 : i32
    %c0_i32_0 = arith.constant 0 : i32
    %c0_i32_1 = arith.constant 0 : i32
    return %arg0, %c0_i32, %c0_i32_0 : i32, i32, i32
  }
  func.func @transform_1(%arg0: i32) -> (i32, i32, i32) {
    %c0_i32 = arith.constant 0 : i32
    %c0_i32_0 = arith.constant 0 : i32
    %c0_i32_1 = arith.constant 0 : i32
    return %arg0, %c0_i32, %c0_i32_0 : i32, i32, i32
  }
  func.func @transform_2(%arg0: i32) -> (i32, i32, i32, i32) {
    %c0_i32 = arith.constant 0 : i32
    %c0_i32_0 = arith.constant 0 : i32
    %c0_i32_1 = arith.constant 0 : i32
    %c0_i32_2 = arith.constant 0 : i32
    %c0_i32_3 = arith.constant 0 : i32
    return %c0_i32, %c0_i32_0, %c0_i32_1, %c0_i32_2 : i32, i32, i32, i32
  }
  func.func @transform_3(%arg0: i32) -> (i32, i32) {
    %c0_i32 = arith.constant 0 : i32
    %c0_i32_0 = arith.constant 0 : i32
    %c0_i32_1 = arith.constant 0 : i32
    return %c0_i32, %c0_i32_0 : i32, i32
  }
  func.func @transform_4(%arg0: i32) -> (i32, i32, i32) {
    %c0_i32 = arith.constant 0 : i32
    %c0_i32_0 = arith.constant 0 : i32
    %c0_i32_1 = arith.constant 0 : i32
    %c0_i32_2 = arith.constant 0 : i32
    return %c0_i32, %c0_i32_0, %c0_i32_1 : i32, i32, i32
  }
  func.func @transform_5(%arg0: i32) -> (i32, i32) {
    %c0_i32 = arith.constant 0 : i32
    %c0_i32_0 = arith.constant 0 : i32
    %c0_i32_1 = arith.constant 0 : i32
    return %c0_i32, %c0_i32_0 : i32, i32
  }
  func.func @transform_6(%arg0: i32) -> (i32, i32, i32) {
    %c0_i32 = arith.constant 0 : i32
    %c0_i32_0 = arith.constant 0 : i32
    %c0_i32_1 = arith.constant 0 : i32
    return %arg0, %c0_i32, %c0_i32_0 : i32, i32, i32
  }
}

</mosaic_0001>

<bundles_post_ra>
// kernel: tpu_custom_call.1
= control target key start
LH: loop header
LB: loop body
LE: loop exit
PB: predicated region body
PF: predicated region fallthrough
CT: control target
= control target key end

     0   :  { %11 = vsyncpa [#allocation3], 0  ;;  %s3943_s0 = inlined_call_operand.vmem [shape: f32[4,2,128], index: 0, kind: input, shape index: {}]   ;;  %s3944_s1 = inlined_call_operand.vmem [shape: f32[4,8,1], index: 1, kind: input, shape index: {}]   ;;  %s3945_s2 = inlined_call_operand.vmem [shape: f32[3,2,8,1], index: 2, kind: input, shape index: {}]   ;;  %s3946_s3 = inlined_call_operand.vmem [shape: f32[8,1], index: 3, kind: input, shape index: {}]   ;;  %s3947_s4 = inlined_call_operand.vmem [shape: f32[3,8,32], index: 4, kind: input, shape index: {}]   ;;  %s3948_s5 = inlined_call_operand.vmem [shape: f32[1,32], index: 5, kind: input, shape index: {}]   ;;  %s3949_s6 = inlined_call_operand.hbm [shape: f32[4,8,32], index: 6, kind: output, shape index: {}]  }
   0x1   :  { %13 = vsyncpa [#allocation3 + $0x1], 0  ;;  %s3066_s21 = smov 0   ;;  %s3068_s22 = smov 0  }
   0x2   :  { %s3070_s23 = smov 0   ;;  %s3072_s24 = smov 0  }
   0x3 LB: > { %s3087_s25 = sadd.s32 4294967295, %s3022_s24   ;;  %s2315_s26 = sadd.s32 4294967294, %s3022_s24   ;;  %s3022_s24 = sphi %s3072_s24, %s3955_s24   ;;  %s3018_s23 = sphi %s3070_s23, %s3954_s23   ;;  %s3014_s22 = sphi %s3068_s22, %s3953_s22   ;;  %s3010_s21 = sphi %s3066_s21, %s3952_s21  }
   0x4   : > { %s3091_s27 = sadd.s32 1, %s3022_s24   ;;  %s162_s28 = sadd.s32 1, %s3018_s23 }
   0x5   : > { %s159_s29 = ssub.s32 %s3022_s24, %s3091_s27  ;;  %p172_p0 = scmp.ne.s32.totalorder %s3018_s23, %s3014_s22 }
   0x6   : > { %p160_p1 = scmp.eq.s32.totalorder %s159_s29, 0  ;;  %p173_p2 = scmp.eq.s32.totalorder %s3087_s25, 1 }
   0x7   : > { %p178_p3 = scmp.ne.s32.totalorder %s3014_s22, %s3010_s21  ;;  %p179_p4 = scmp.eq.s32.totalorder %s2315_s26, 1 }
   0x8   : > { %s3102_s30 = scalar_select %p160_p1, %s3018_s23, %s162_s28  }
   0x9   : > { %p3104_p5 = por %p173_p2, %p172_p0  ;;  %p3108_p6 = por %p179_p4, %p178_p3 }
   0xa   : > { %p2318_p7 = scmp.ge.s32.totalorder %s3022_s24, 1  ;;  %p227_p8 = scmp.lt.s32.totalorder %s3022_s24, 3 }
   0xc   : > { %p228_p9 = pnand %p2318_p7, %p227_p8 }
   0xd   : > { %v279_v0 = vld [vmem:[%s3945_s2 + $0x10] sm:$0xff] (!%p228_p9)  ;;  %v277_v1 = vld [vmem:[%s3945_s2] sm:$0xff] (!%p228_p9)  ;;  %s2320_s13 = sshll.u32 (!%p228_p9), %s3087_s25, 1  ;;  %v3024_v2 = vmov (!%p228_p9), 0   ;;  %v280_v3 = vld [vmem:[%s3945_s2 + $0x18] sm:$0xff] (!%p228_p9)  ;;  %vm370_vm0 = vcmask (!%p228_p9), 1042434   ;;  %v286_v13 = vlaneseq (!%p228_p9) }
   0xe   : > { %231 = sbr.rel (%p228_p9) target bundleno = 774 (0x306), region = 44  ;;  %2823 = vset.pattern.permute.xlu1 (!%p228_p9), %v3024_v2  ;;  %2822 = vset.pattern.permute.xlu0 (!%p228_p9), %v3024_v2  ;;  %p263_p10 = scmp.lt.s32.totalorder (!%p228_p9), %s2320_s13, 3  ;;  %v278_v4 = vld [vmem:[%s3945_s2 + $0x8] sm:$0xff] (!%p228_p9)  ;;  %vm323_vm1 = vcmask (!%p228_p9), 1041409   ;;  %v281_v10 = vld [vmem:[%s3945_s2 + $0x20] sm:$0xff] (!%p228_p9)  ;;  %vm696_vm2 = vcmask (!%p228_p9), 64512  }
   0xf   : > { %363 = vperm.xlu1 (!%p228_p9), %2823, %v279_v0   ;;  %296 = vperm.xlu0 (!%p228_p9), %2822, %v277_v1   ;;  %s3025_s28 = smov (!%p228_p9), 127   ;;  %s3026_s10 = smov (!%p228_p9), 126   ;;  %v282_v11 = vld [vmem:[%s3945_s2 + $0x28] sm:$0xff] (!%p228_p9)  ;;  %v509_v12 = vld [vmem:[%s3946_s3] sm:$0xff] (!%p228_p9)  ;;  %v3027_v14 = vmov (!%p228_p9), 1966171168  }
  0x10   : > { %v330_v15 = vunpack.c.l.s4 (!%p228_p9), %v3027_v14  ;;  %v3144_v17 = vshrl.u32 (!%p228_p9), %v286_v13, 7  ;;  %vm627_vm3 = vcmask (!%p228_p9), 1046528   ;;  %vm1277_vm4 = vcmask (!%p228_p9), 1045504   ;;  %s259_s12 = sand.u32 (!%p228_p9), 1, %s3014_s22   ;;  %s2460_s16 = sshll.u32 (!%p228_p9), %s3087_s25, 8 }
  0x11   : > { %vm1973_vm6 = vcmask (!%p228_p9), 261120   ;;  %vm2195_vm7 = vcmask (!%p228_p9), 1043459   ;;  %vm2198_vm8 = vcmask (!%p228_p9), 1044484   ;;  %vm2201_vm9 = vcmask (!%p228_p9), 1045509   ;;  %s2319_s14 = sshll.u32 (!%p228_p9), %s259_s12, 4  ;;  %s3893_s20 = scalar_lea.hbm (!%p228_p9), %s3949_s6, %s2460_s16 }
  0x12   : > { %v331_v19 = vunpack.c.0.s8 (!%p228_p9), %v330_v15  ;;  %v305_v20 = vsub.s32 (!%p228_p9), 1, %v3144_v17  ;;  %v288_v21 = vsub.s32 (!%p228_p9), 0, %v3144_v17  ;;  %vm2204_vm10 = vcmask (!%p228_p9), 1046534   ;;  %s3834_s15 = scalar_lea.vmem (!%p228_p9), [#allocation2], %s2319_s14 }
  0x13   : > { %411 = vperm.xlu1 (!%p228_p9), %2823, %v280_v3   ;;  %313 = vperm.xlu0 (!%p228_p9), %2822, %v278_v4   ;;  %vm2207_vm11 = vcmask (!%p228_p9), 1047559   ;;  %s2241_s17 = sshll.u32 (!%p228_p9), %s3834_s15, 4  ;;  %s3895_s17 = int_to_ptr.vmem [resolvable:$true] %s2241_s17 }
  0x14   : > { %v334_v24 = vsub.s32 (!%p228_p9), %v331_v19, %v3144_v17  ;;  %s2960_s25 = scalar_lea.vmem (!%p228_p9), %s3895_s17, 256 }
  0x15   : > { %s3957_s13 = smov (!%p263_p10, %s2320_s13), 3  ;;  %p2961_p11 = scmp.ne.s32.totalorder %s3895_s17, %s2960_s25 }
  0x16   : > { %s2321_s18 = sshll.u32 %s3957_s13, 1 }
  0x17   : > { %s266_s26 = scalar_lea.vmem %s3943_s0, %s2321_s18  ;;  %p2962_p12 = pnand %p2961_p11, %p3104_p5 }
  0x18   : > { %v275_v5 = vld [vmem:[%s266_s26] sm:$0x3]  ;;  %v276_v6 = vld [vmem:[%s266_s26 + $0x2] sm:$0x3]  ;;  %s3902_s26 = scalar_lea.sflag [#allocation3], %s259_s12 }
  0x19   : > { %v322_v7 = vrot.slane %v276_v6, 7  ;;  %v306_v25 = vrot.slane %v275_v5, %v305_v20  ;;  %v289_v26 = vrot.slane %v275_v5, %v288_v21  ;;  %v310_v27 = vrot.slane %v276_v6, %v305_v20  ;;  %p2963_p13 = pneg %p2962_p12 }
  0x1a   : > { %v293_v32 = vrot.slane %v276_v6, %v288_v21 }
  0x1b   : > { %v371_v8 = vsel %vm370_vm0, %v322_v7, %v275_v5  ;;  %v324_v9 = vsel %vm323_vm1, %v322_v7, %v275_v5 }
  0x1c   : > { %372 = vrot.lane.b32.xlu0 %v371_v8, %s3025_s28  ;;  %325 = vrot.lane.b32.xlu1 %v324_v9, %s3025_s28  ;;  %s2323_s28 = sshll.u32 %s3957_s13, 3 }
  0x20   : > { %456 = vperm.xlu0 %2822, %v281_v10   ;;  %418 = vrot.lane.b32.xlu1 %v324_v9, %s3026_s10 }
  0x24   : > { %463 = vrot.lane.b32.xlu0 %v371_v8, %s3026_s10  ;;  %502 = vperm.xlu1 %2823, %v282_v11   ;;  %s272_s10 = scalar_lea.vmem %s3944_s1, %s2323_s28  ;;  %s3028_s28 = smov [#allocation2]  }
  0x25   : > { %s2964_s29 = sshll.u32 %s3028_s28, 4  ;;  %s2965_s29 = int_to_ptr.vmem [resolvable:$false] %s2964_s29 }
  0x26   : > { %s2966_s9 = scalar_lea.vmem %s2965_s29, 512  ;;  %p2967_p0 = scmp.lt.s32.totalorder %s3895_s17, %s2965_s29 }
  0x27   : > { %p2968_p1 = scmp.lt.s32.totalorder %s2966_s9, %s2960_s25 }
  0x28   : > { %512 = vperm.xlu0 %2822, %v509_v12  }
  0x29   : > { %p2969_p2 = por %p2968_p1, %p2967_p0 }
  0x2b   : > { %p2970_p3 = pnand %p2969_p2, %p2963_p13 }
  0x8e   : > { %v364_v16 = vpop.permute.xlu1 %363  ;;  %v297_v18 = vpop.permute.xlu0 %296 }
  0x8f   : > { %v299_v38 = vmul.f32 %v297_v18, %v289_v26  ;;  %v300_v46 = vmul.f32 %v297_v18, %v293_v32 }
  0x92   : > { %v412_v22 = vpop.permute.xlu1 %411  ;;  %v314_v23 = vpop.permute.xlu0 %313 }
  0x93   : > { %v316_v33 = vmul.f32 %v314_v23, %v306_v25  ;;  %v317_v39 = vmul.f32 %v314_v23, %v310_v27 }
  0x95   : > { %v318_v48 = vadd.f32 %v316_v33, %v299_v38  ;;  %v319_v55 = vadd.f32 %v317_v39, %v300_v46  ;;  %v283_v33 = vld [vmem:[%s3947_s4] sm:$0xff] }
  0x96   : > { %v373_v28 = vpop.permute.xlu0 %372  ;;  %v326_v29 = vpop.permute.xlu1 %325  ;;  %2610 = vmatprep.subr.mxu0 %v283_v33 }
  0x97   : > { %v382_v30 = vrot.slane %v373_v28, %v334_v24  ;;  %v335_v31 = vrot.slane %v326_v29, %v334_v24  ;;  %2611 = vmatpush3.msra.mxu0 %v283_v33 }
  0x99   : > { %v383_v34 = vcombine.high %v382_v30, %v382_v30  ;;  %v390_v35 = vrot.slane %v382_v30, %v334_v24  ;;  %v336_v36 = vcombine.high %v335_v31, %v335_v31  ;;  %v343_v37 = vrot.slane %v335_v31, %v334_v24 }
  0x9a   : > { %v419_v40 = vpop.permute.xlu1 %418 }
  0x9b   : > { %v397_v41 = vrot.slane %v383_v34, %v334_v24  ;;  %v398_v42 = vcombine.high %v390_v35, %v390_v35  ;;  %v350_v43 = vrot.slane %v336_v36, %v334_v24  ;;  %v354_v44 = vrot.slane %v343_v37, %v288_v21  ;;  %v284_v34 = vld [vmem:[%s3947_s4 + $0x8] sm:$0xff]  ;;  %v285_v35 = vld [vmem:[%s3947_s4 + $0x10] sm:$0xff]  ;;  %v2118_v37 = vld [vmem:[%s272_s10] sm:$0xff] }
  0x9c   : > { %v428_v47 = vrot.slane %v419_v40, %v334_v24  ;;  %2560 = vmatprep.subr.mxu1 %v284_v34  ;;  %2660 = vmatprep.subr.mxu0 %v285_v35  ;;  %v2119_v36 = vld [vmem:[%s272_s10 + $0x8] sm:$0xff] }
  0x9d   : > { %v402_v49 = vrot.slane %v397_v41, %v288_v21  ;;  %v358_v50 = vrot.slane %v350_v43, %v288_v21  ;;  %v366_v51 = vmul.f32 %v364_v16, %v354_v44  ;;  %v406_v52 = vrot.slane %v398_v42, %v288_v21  ;;  %2561 = vmatpush3.msra.mxu1 %v284_v34 }
  0x9e   : > { %v429_v53 = vcombine.high %v428_v47, %v428_v47  ;;  %v436_v54 = vrot.slane %v428_v47, %v334_v24  ;;  %2710 = vmatprep.subr.mxu1 %v283_v33 }
  0x9f   : > { %v457_v45 = vpop.permute.xlu0 %456  ;;  %v367_v56 = vmul.f32 %v364_v16, %v358_v50  ;;  %v414_v57 = vmul.f32 %v412_v22, %v402_v49  ;;  %v368_v58 = vadd.f32 %v366_v51, %v318_v48  ;;  %v415_v0 = vmul.f32 %v412_v22, %v406_v52 }
  0xa0   : > { %v443_v60 = vrot.slane %v429_v53, %v334_v24  ;;  %v447_v61 = vrot.slane %v436_v54, %v288_v21 }
  0xa1   : > { %v369_v63 = vadd.f32 %v367_v56, %v319_v55  ;;  %v416_v4 = vadd.f32 %v414_v57, %v368_v58 }
  0xa2   : > { %v451_v1 = vrot.slane %v443_v60, %v288_v21  ;;  %v459_v5 = vmul.f32 %v457_v45, %v447_v61 }
  0xa3   : > { %v464_v59 = vpop.permute.xlu0 %463  ;;  %v417_v6 = vadd.f32 %v415_v0, %v369_v63  ;;  %v503_v12 = vpop.permute.xlu1 %502 }
  0xa4   : > { %v473_v62 = vrot.slane %v464_v59, %v334_v24  ;;  %v460_v7 = vmul.f32 %v457_v45, %v451_v1  ;;  %v461_v13 = vadd.f32 %v459_v5, %v416_v4 }
  0xa6   : > { %v474_v2 = vcombine.high %v473_v62, %v473_v62  ;;  %v481_v3 = vrot.slane %v473_v62, %v334_v24  ;;  %v462_v14 = vadd.f32 %v460_v7, %v417_v6 }
  0xa7   : > { %v513_v20 = vpop.permute.xlu0 %512 }
  0xa8   : > { %v488_v8 = vrot.slane %v474_v2, %v334_v24  ;;  %v489_v9 = vcombine.high %v481_v3, %v481_v3 }
  0xaa   : > { %v493_v10 = vrot.slane %v488_v8, %v288_v21  ;;  %v497_v11 = vrot.slane %v489_v9, %v288_v21 }
  0xac   : > { %v505_v15 = vmul.f32 %v503_v12, %v493_v10  ;;  %v506_v16 = vmul.f32 %v503_v12, %v497_v11 }
  0xae   : > { %v507_v18 = vadd.f32 %v505_v15, %v461_v13  ;;  %v508_v19 = vadd.f32 %v506_v16, %v462_v14 }
  0xb0   : > { %v515_v22 = vadd.f32 %v513_v20, %v507_v18  ;;  %v516_v23 = vadd.f32 %v513_v20, %v508_v19 }
  0xb2   : > { %v2324_v25 = vmul.f32 -1.442695, %v515_v22  ;;  %v2325_v26 = vmul.f32 -1.442695, %v516_v23 }
  0xb4   : > { %2824 = vpow2.f32 %v2324_v25 }
  0xb5   : > { %2826 = vpow2.f32 %v2325_v26 }
  0xbe   : > { %v2825_v27 = vpop.eup %2824 }
  0xbf   : > { %v2827_v28 = vpop.eup %2826  ;;  %v523_v24 = vadd.f32 1.0, %v2825_v27 }
  0xc0   : > { %v524_v29 = vadd.f32 1.0, %v2827_v28 }
  0xc1   : > { %2828 = vrcp.f32 %v523_v24 }
  0xc2   : > { %2830 = vrcp.f32 %v524_v29 }
  0xcb   : > { %v2829_v21 = vpop.eup %2828 }
  0xcc   : > { %v2831_v30 = vpop.eup %2830  ;;  %v529_v31 = vmul.f32 %v2829_v21, %v515_v22 }
  0xcd   : > { %v530_v32 = vmul.f32 %v2831_v30, %v516_v23 }
  0xce   : > { %531 = vxpose.xlu1.b32.start.end [1/1] (short) %v529_v31, 128 }
  0xcf   : > { %563 = vxpose.xlu0.b32.start.end [1/1] (short) %v530_v32, 128 }
 0x128   : > { %2126 = vperm.xlu1 %2823, %v2119_v36  }
 0x134   : > { %2122 = vperm.xlu0 %2822, %v2118_v37  }
 0x14e   : > { %v3162_v38 = vpop.trf.xlu1 }
 0x14f   : > { %v3164_v39 = vpop.trf.xlu0  ;;  %2612 = vmatprep.mubr.msk.f32.mxu0 %vm696_vm2, %v3162_v38  ;;  %v628_v41 = vrot.slane %v3162_v38, 1  ;;  %v1278_v30 = vrot.slane %v3162_v38, 2 }
 0x150   : > { %v659_v32 = vrot.slane %v3164_v39, 1 }
 0x152   : > { %v3168_v40 = vpop.trf.xlu1 }
 0x153   : > { %v3171_v42 = vpop.trf.xlu0  ;;  %v629_v43 = vrot.slane %v3168_v40, 1  ;;  %2613 = vmatmul.mubr.msk.f32.vlgmr.msra.gmra.mrb[0].mxu0 %vm696_vm2, %v3168_v40  ;;  %v1279_v24 = vrot.slane %v3168_v40, 2 }
 0x154   : > { %2661 = vmatpush3.msra.mxu0 %v285_v35  ;;  %v660_v35 = vrot.slane %v3171_v42, 1 }
 0x155   : > { %v630_v44 = vsel %vm627_vm3, %v628_v41, %v629_v43  ;;  %v1280_v40 = vsel %vm1277_vm4, %v1278_v30, %v1279_v24 }
 0x156   : > { %2562 = vmatprep.mubr.msk.f32.mxu1 %vm696_vm2, %v630_v44  ;;  %v3180_v45 = vpop.trf.xlu1 }
 0x157   : > { %v631_v46 = vrot.slane %v3180_v45, 1  ;;  %2615 = vmatprep.mubr.msk.f32.mxu0 %vm696_vm2, %v3180_v45  ;;  %v3185_v47 = vpop.trf.xlu0 }
 0x159   : > { %v632_v48 = vsel %vm627_vm3, %v629_v43, %v631_v46 }
 0x15a   : > { %2563 = vmatmul.mubr.msk.f32.vlgmr.msra.gmra.mrb[0].mxu1 %vm696_vm2, %v632_v48  ;;  %v3189_v49 = vpop.trf.xlu1 }
 0x15b   : > { %v633_v50 = vrot.slane %v3189_v49, 1  ;;  %2616 = vmatmul.mubr.msk.f32.gmra.mrb[2].mxu0 %vm696_vm2, %v3189_v49  ;;  %2711 = vmatpush3.msra.mxu1 %v283_v33  ;;  %v3195_v52 = vpop.trf.xlu0  ;;  %v1281_v33 = vrot.slane %v3180_v45, 2  ;;  %v1283_v36 = vrot.slane %v3189_v49, 2  ;;  %v662_v45 = vrot.slane %v3185_v47, 1 }
 0x15d   : > { %v634_v51 = vsel %vm627_vm3, %v631_v46, %v633_v50  ;;  %v1282_v46 = vsel %vm1277_vm4, %v1279_v24, %v1281_v33 }
 0x15e   : > { %2565 = vmatprep.mubr.msk.f32.mxu1 %vm696_vm2, %v634_v51  ;;  %v3198_v53 = vpop.trf.xlu1 }
 0x15f   : > { %v635_v54 = vrot.slane %v3198_v53, 1  ;;  %2618 = vmatprep.mubr.msk.f32.mxu0 %vm696_vm2, %v3198_v53  ;;  %v3210_v58 = vpop.trf.xlu0  ;;  %v1285_v48 = vrot.slane %v3198_v53, 2 }
 0x160   : > { %v666_v53 = vrot.slane %v3210_v58, 1  ;;  %v1316_v38 = vrot.slane %v3210_v58, 2 }
 0x161   : > { %v636_v55 = vsel %vm627_vm3, %v633_v50, %v635_v54  ;;  %v664_v50 = vrot.slane %v3195_v52, 1 }
 0x162   : > { %2566 = vmatmul.mubr.msk.f32.gmra.mrb[2].mxu1 %vm696_vm2, %v636_v55  ;;  %v3205_v56 = vpop.trf.xlu1 }
 0x163   : > { %v637_v57 = vrot.slane %v3205_v56, 1  ;;  %2619 = vmatmul.mubr.msk.f32.gmra.mrb[4].mxu0 %vm696_vm2, %v3205_v56  ;;  %v3220_v63 = vpop.trf.xlu0  ;;  %v1287_v51 = vrot.slane %v3205_v56, 2  ;;  %v663_v56 = vsel %vm627_vm3, %v660_v35, %v662_v45 }
 0x165   : > { %v638_v59 = vsel %vm627_vm3, %v635_v54, %v637_v57  ;;  %v1284_v54 = vsel %vm1277_vm4, %v1281_v33, %v1283_v36 }
 0x166   : > { %2568 = vmatprep.mubr.msk.f32.mxu1 %vm696_vm2, %v638_v59  ;;  %v3214_v60 = vpop.trf.xlu1  ;;  %v668_v59 = vrot.slane %v3220_v63, 1 }
 0x167   : > { %v639_v61 = vrot.slane %v3214_v60, 1  ;;  %2621 = vmatprep.mubr.msk.f32.mxu0 %vm696_vm2, %v3214_v60  ;;  %v3235_v5 = vpop.trf.xlu0  ;;  %v1289_v55 = vrot.slane %v3214_v60, 2 }
 0x168   : > { %v670_v60 = vrot.slane %v3235_v5, 1 }
 0x169   : > { %v640_v62 = vsel %vm627_vm3, %v637_v57, %v639_v61  ;;  %v1286_v57 = vsel %vm1277_vm4, %v1283_v36, %v1285_v48 }
 0x16a   : > { %2569 = vmatmul.mubr.msk.f32.gmra.mrb[4].mxu1 %vm696_vm2, %v640_v62  ;;  %v3223_v0 = vpop.trf.xlu1  ;;  %v665_v62 = vsel %vm627_vm3, %v662_v45, %v664_v50 }
 0x16b   : > { %v641_v1 = vrot.slane %v3223_v0, 1  ;;  %2622 = vmatmul.mubr.msk.f32.gmra.mrb[6].mxu0 %vm696_vm2, %v3223_v0  ;;  %v3245_v10 = vpop.trf.xlu0 }
 0x16d   : > { %v642_v2 = vsel %vm627_vm3, %v639_v61, %v641_v1  ;;  %v1291_v61 = vrot.slane %v3223_v0, 2  ;;  %v667_v0 = vsel %vm627_vm3, %v664_v50, %v666_v53 }
 0x16e   : > { %2571 = vmatprep.mubr.msk.f32.mxu1 %vm696_vm2, %v642_v2  ;;  %v3230_v3 = vpop.trf.xlu1 }
 0x16f   : > { %v643_v4 = vrot.slane %v3230_v3, 1  ;;  %2624 = vmatprep.mubr.msk.f32.mxu0 %vm696_vm2, %v3230_v3  ;;  %v3260_v16 = vpop.trf.xlu0 }
 0x171   : > { %v644_v6 = vsel %vm627_vm3, %v641_v1, %v643_v4  ;;  %v1288_v1 = vsel %vm1277_vm4, %v1285_v48, %v1287_v51 }
 0x172   : > { %2572 = vmatmul.mubr.msk.f32.gmra.mrb[6].mxu1 %vm696_vm2, %v644_v6  ;;  %v3239_v7 = vpop.trf.xlu1  ;;  %v1290_v6 = vsel %vm1277_vm4, %v1287_v51, %v1289_v55 }
 0x173   : > { %v645_v8 = vrot.slane %v3239_v7, 1  ;;  %2625 = vmatmul.mubr.msk.f32.gmra.mrb[8].mxu0 %vm696_vm2, %v3239_v7  ;;  %v3270_v23 = vpop.trf.xlu0 }
 0x175   : > { %v646_v9 = vsel %vm627_vm3, %v643_v4, %v645_v8  ;;  %v1293_v4 = vrot.slane %v3230_v3, 2  ;;  %v674_v3 = vrot.slane %v3260_v16, 1 }
 0x176   : > { %2574 = vmatprep.mubr.msk.f32.mxu1 %vm696_vm2, %v646_v9  ;;  %v3248_v11 = vpop.trf.xlu1  ;;  %v1295_v9 = vrot.slane %v3239_v7, 2  ;;  %v671_v7 = vsel %vm627_vm3, %v668_v59, %v670_v60 }
 0x177   : > { %v647_v12 = vrot.slane %v3248_v11, 1  ;;  %2627 = vmatprep.mubr.msk.f32.mxu0 %vm696_vm2, %v3248_v11  ;;  %v3286_v21 = vpop.trf.xlu0 }
 0x178   : > { %v1296_v24 = vsel %vm1277_vm4, %v1293_v4, %v1295_v9 }
 0x179   : > { %v648_v13 = vsel %vm627_vm3, %v645_v8, %v647_v12  ;;  %v672_v8 = vrot.slane %v3245_v10, 1 }
 0x17a   : > { %2575 = vmatmul.mubr.msk.f32.gmra.mrb[8].mxu1 %vm696_vm2, %v648_v13  ;;  %v3255_v14 = vpop.trf.xlu1  ;;  %v1292_v13 = vsel %vm1277_vm4, %v1289_v55, %v1291_v61 }
 0x17b   : > { %v649_v15 = vrot.slane %v3255_v14, 1  ;;  %2628 = vmatmul.mubr.msk.f32.gmra.mrb[10].mxu0 %vm696_vm2, %v3255_v14  ;;  %v3311_v49 = vpop.trf.xlu0 }
 0x17c   : > { %v680_v33 = vrot.slane %v3311_v49, 1 }
 0x17d   : > { %v650_v18 = vsel %vm627_vm3, %v647_v12, %v649_v15  ;;  %v669_v12 = vsel %vm627_vm3, %v666_v53, %v668_v59  ;;  %v1310_v53 = vrot.slane %v3171_v42, 2  ;;  %v1312_v59 = vrot.slane %v3185_v47, 2 }
 0x17e   : > { %2577 = vmatprep.mubr.msk.f32.mxu1 %vm696_vm2, %v650_v18  ;;  %v3264_v19 = vpop.trf.xlu1 }
 0x17f   : > { %v651_v20 = vrot.slane %v3264_v19, 1  ;;  %2630 = vmatprep.mubr.msk.f32.mxu0 %vm696_vm2, %v3264_v19  ;;  %v3334_v2 = vpop.trf.xlu0 }
 0x181   : > { %v652_v22 = vsel %vm627_vm3, %v649_v15, %v651_v20  ;;  %v1297_v15 = vrot.slane %v3248_v11, 2  ;;  %v678_v11 = vrot.slane %v3286_v21, 1 }
 0x182   : > { %2578 = vmatmul.mubr.msk.f32.gmra.mrb[10].mxu1 %vm696_vm2, %v652_v22  ;;  %v3273_v25 = vpop.trf.xlu1  ;;  %v676_v22 = vrot.slane %v3270_v23, 1 }
 0x183   : > { %v653_v26 = vrot.slane %v3273_v25, 1  ;;  %2631 = vmatmul.mubr.msk.f32.gmra.mrb[12].mxu0 %vm696_vm2, %v3273_v25  ;;  %v3352_v18 = vpop.trf.xlu0  ;;  %v681_v48 = vsel %vm627_vm3, %v678_v11, %v680_v33 }
 0x184   : > { %v677_v36 = vsel %vm627_vm3, %v674_v3, %v676_v22  ;;  %v684_v45 = vrot.slane %v3352_v18, 1 }
 0x185   : > { %v654_v27 = vsel %vm627_vm3, %v651_v20, %v653_v26  ;;  %v1294_v20 = vsel %vm1277_vm4, %v1291_v61, %v1293_v4 }
 0x186   : > { %2580 = vmatprep.mubr.msk.f32.mxu1 %vm696_vm2, %v654_v27  ;;  %v3280_v28 = vpop.trf.xlu1  ;;  %v673_v27 = vsel %vm627_vm3, %v670_v60, %v672_v8 }
 0x187   : > { %v655_v29 = vrot.slane %v3280_v28, 1  ;;  %2633 = vmatprep.mubr.msk.f32.mxu0 %vm696_vm2, %v3280_v28 }
 0x189   : > { %v656_v31 = vsel %vm627_vm3, %v653_v26, %v655_v29  ;;  %v1299_v26 = vrot.slane %v3255_v14, 2  ;;  %v1298_v14 = vsel %vm1277_vm4, %v1295_v9, %v1297_v15  ;;  %v1320_v9 = vrot.slane %v3235_v5, 2 }
 0x18a   : > { %2581 = vmatmul.mubr.msk.f32.gmra.mrb[12].mxu1 %vm696_vm2, %v656_v31  ;;  %v3293_v34 = vpop.trf.xlu1  ;;  %v675_v31 = vsel %vm627_vm3, %v672_v8, %v674_v3  ;;  %v1324_v3 = vrot.slane %v3260_v16, 2 }
 0x18b   : > { %v657_v37 = vrot.slane %v3293_v34, 1  ;;  %2634 = vmatmul.mubr.msk.f32.gmra.mrb[14].mxu0 %vm696_vm2, %v3293_v34 }
 0x18c   : > { %2662 = vmatprep.mubr.msk.f32.mxu0 %vm696_vm2, %v1280_v40  ;;  %v3374_v40 = vpop.trf.xlu0 }
 0x18d   : > { %v658_v43 = vsel %vm627_vm3, %v655_v29, %v657_v37  ;;  %v694_v44 = vsel %vm627_vm3, %v657_v37, %v628_v41  ;;  %v661_v41 = vsel %vm627_vm3, %v659_v32, %v660_v35  ;;  %v1301_v29 = vrot.slane %v3264_v19, 2 }
 0x18e   : > { %2583 = vmatprep.mubr.msk.f32.mxu1 %vm696_vm2, %v658_v43  ;;  %v1303_v35 = vrot.slane %v3273_v25, 2  ;;  %v1300_v37 = vsel %vm1277_vm4, %v1297_v15, %v1299_v26  ;;  %v682_v19 = vrot.slane %v3334_v2, 1  ;;  %v1305_v43 = vrot.slane %v3280_v28, 2 }
 0x18f   : > { %2584 = vmatmul.mubr.msk.f32.gmra.mrb[14].mxu1 %vm696_vm2, %v694_v44  ;;  %2663 = vmatmul.mubr.msk.f32.vlgmr.msra.gmra.mrb[0].mxu0 %vm696_vm2, %v1282_v46  ;;  %v679_v25 = vsel %vm627_vm3, %v676_v22, %v678_v11  ;;  %v1302_v44 = vsel %vm1277_vm4, %v1299_v26, %v1301_v29  ;;  %v1307_v46 = vrot.slane %v3293_v34, 2  ;;  %v686_v28 = vrot.slane %v3374_v40, 1 }
 0x190   : > { %2586 = vmatprep.mubr.msk.f32.mxu1 %vm696_vm2, %v661_v41  ;;  %2665 = vmatprep.mubr.msk.f32.mxu0 %vm696_vm2, %v1284_v54  ;;  %v1304_v50 = vsel %vm1277_vm4, %v1301_v29, %v1303_v35  ;;  %v3391_v51 = vpop.trf.xlu0  ;;  %v683_v41 = vsel %vm627_vm3, %v680_v33, %v682_v19  ;;  %v1306_v34 = vsel %vm1277_vm4, %v1303_v35, %v1305_v43  ;;  %v1309_v54 = vrot.slane %v3164_v39, 2 }
 0x191   : > { %v685_v55 = vsel %vm627_vm3, %v682_v19, %v684_v45  ;;  %v687_v61 = vsel %vm627_vm3, %v684_v45, %v686_v28  ;;  %v1330_v22 = vrot.slane %v3311_v49, 2  ;;  %v3509_v45 = vld [vmem:[%s3948_s5] ss:$0 sm:$0xff] }
 0x192   : > { %v1311_v4 = vsel %vm1277_vm4, %v1309_v54, %v1310_v53 }
 0x193   : > { %2587 = vmatmul.mubr.msk.f32.gmra.mrb[16].mxu1 %vm696_vm2, %v663_v56  ;;  %2666 = vmatmul.mubr.msk.f32.gmra.mrb[2].mxu0 %vm696_vm2, %v1286_v57  ;;  %v1308_v56 = vsel %vm1277_vm4, %v1305_v43, %v1307_v46  ;;  %v688_v57 = vrot.slane %v3391_v51, 1 }
 0x194   : > { %2589 = vmatprep.mubr.msk.f32.mxu1 %vm696_vm2, %v665_v62  ;;  %2668 = vmatprep.mubr.msk.f32.mxu0 %vm696_vm2, %v1288_v1  ;;  %v1344_v62 = vsel %vm1277_vm4, %v1307_v46, %v1278_v30  ;;  %v1314_v1 = vrot.slane %v3195_v52, 2 }
 0x195   : > { %v689_v60 = vsel %vm627_vm3, %v686_v28, %v688_v57  ;;  %v695_v30 = vsel %vm627_vm3, %v688_v57, %v659_v32  ;;  %v1322_v32 = vrot.slane %v3245_v10, 2 }
 0x196   : > { %v1315_v8 = vsel %vm1277_vm4, %v1312_v59, %v1314_v1 }
 0x197   : > { %2590 = vmatmul.mubr.msk.f32.gmra.mrb[18].mxu1 %vm696_vm2, %v667_v0  ;;  %2669 = vmatmul.mubr.msk.f32.gmra.mrb[4].mxu0 %vm696_vm2, %v1290_v6  ;;  %v1313_v0 = vsel %vm1277_vm4, %v1310_v53, %v1312_v59  ;;  %v1318_v6 = vrot.slane %v3220_v63, 2 }
 0x198   : > { %2592 = vmatprep.mubr.msk.f32.mxu1 %vm696_vm2, %v669_v12  ;;  %2671 = vmatprep.mubr.msk.f32.mxu0 %vm696_vm2, %v1292_v13  ;;  %v1317_v12 = vsel %vm1277_vm4, %v1314_v1, %v1316_v38 }
 0x199   : > { %v1319_v13 = vsel %vm1277_vm4, %v1316_v38, %v1318_v6  ;;  %v1321_v15 = vsel %vm1277_vm4, %v1318_v6, %v1320_v9 }
 0x19b   : > { %2593 = vmatmul.mubr.msk.f32.gmra.mrb[20].mxu1 %vm696_vm2, %v671_v7  ;;  %2672 = vmatmul.mubr.msk.f32.gmra.mrb[6].mxu0 %vm696_vm2, %v1294_v20  ;;  %v1326_v7 = vrot.slane %v3270_v23, 2  ;;  %v1325_v20 = vsel %vm1277_vm4, %v1322_v32, %v1324_v3 }
 0x19c   : > { %2595 = vmatprep.mubr.msk.f32.mxu1 %vm696_vm2, %v673_v27  ;;  %2674 = vmatprep.mubr.msk.f32.mxu0 %vm696_vm2, %v1296_v24  ;;  %v1334_v27 = vrot.slane %v3352_v18, 2 }
 0x19f   : > { %2596 = vmatmul.mubr.msk.f32.gmra.mrb[22].mxu1 %vm696_vm2, %v675_v31  ;;  %2675 = vmatmul.mubr.msk.f32.gmra.mrb[8].mxu0 %vm696_vm2, %v1298_v14 }
 0x1a0   : > { %2598 = vmatprep.mubr.msk.f32.mxu1 %vm696_vm2, %v677_v36  ;;  %2677 = vmatprep.mubr.msk.f32.mxu0 %vm696_vm2, %v1300_v37 }
 0x1a3   : > { %2599 = vmatmul.mubr.msk.f32.gmra.mrb[24].mxu1 %vm696_vm2, %v679_v25  ;;  %2678 = vmatmul.mubr.msk.f32.gmra.mrb[10].mxu0 %vm696_vm2, %v1302_v44 }
 0x1a4   : > { %2601 = vmatprep.mubr.msk.f32.mxu1 %vm696_vm2, %v681_v48  ;;  %2680 = vmatprep.mubr.msk.f32.mxu0 %vm696_vm2, %v1304_v50 }
 0x1a7   : > { %2602 = vmatmul.mubr.msk.f32.gmra.mrb[26].mxu1 %vm696_vm2, %v683_v41  ;;  %2681 = vmatmul.mubr.msk.f32.gmra.mrb[12].mxu0 %vm696_vm2, %v1306_v34 }
 0x1a8   : > { %2604 = vmatprep.mubr.msk.f32.mxu1 %vm696_vm2, %v685_v55  ;;  %2683 = vmatprep.mubr.msk.f32.mxu0 %vm696_vm2, %v1308_v56 }
 0x1ab   : > { %2605 = vmatmul.mubr.msk.f32.gmra.mrb[28].mxu1 %vm696_vm2, %v687_v61  ;;  %2684 = vmatmul.mubr.msk.f32.gmra.mrb[14].mxu0 %vm696_vm2, %v1344_v62 }
 0x1ac   : > { %2607 = vmatprep.mubr.msk.f32.mxu1 %vm696_vm2, %v689_v60  ;;  %2686 = vmatprep.mubr.msk.f32.mxu0 %vm696_vm2, %v1311_v4 }
 0x1af   : > { %2608 = vmatmul.mubr.msk.f32.gmra.mrb[30].mxu1 %vm696_vm2, %v695_v30  ;;  %2687 = vmatmul.mubr.msk.f32.gmra.mrb[16].mxu0 %vm696_vm2, %v1313_v0 }
 0x1b0   : > { %2636 = vmatprep.mubr.msk.f32.mxu1 %vm696_vm2, %v3164_v39  ;;  %2689 = vmatprep.mubr.msk.f32.mxu0 %vm696_vm2, %v1315_v8 }
 0x1b3   : > { %2637 = vmatmul.mubr.msk.f32.vlgmr.msra.gmra.mrb[16].mxu1 %vm696_vm2, %v3171_v42  ;;  %2690 = vmatmul.mubr.msk.f32.gmra.mrb[18].mxu0 %vm696_vm2, %v1317_v12  ;;  %v1323_v42 = vsel %vm1277_vm4, %v1320_v9, %v1322_v32 }
 0x1b4   : > { %2639 = vmatprep.mubr.msk.f32.mxu1 %vm696_vm2, %v3185_v47  ;;  %2692 = vmatprep.mubr.msk.f32.mxu0 %vm696_vm2, %v1319_v13  ;;  %v1328_v47 = vrot.slane %v3286_v21, 2 }
 0x1b6   : > { %v1329_v26 = vsel %vm1277_vm4, %v1326_v7, %v1328_v47 }
 0x1b7   : > { %2640 = vmatmul.mubr.msk.f32.gmra.mrb[18].mxu1 %vm696_vm2, %v3195_v52  ;;  %2693 = vmatmul.mubr.msk.f32.gmra.mrb[20].mxu0 %vm696_vm2, %v1321_v15  ;;  %v1327_v52 = vsel %vm1277_vm4, %v1324_v3, %v1326_v7 }
 0x1b8   : > { %2642 = vmatprep.mubr.msk.f32.mxu1 %vm696_vm2, %v3210_v58  ;;  %2695 = vmatprep.mubr.msk.f32.mxu0 %vm696_vm2, %v1323_v42  ;;  %v1332_v58 = vrot.slane %v3334_v2, 2 }
 0x1ba   : > { %v1333_v24 = vsel %vm1277_vm4, %v1330_v22, %v1332_v58 }
 0x1bb   : > { %2643 = vmatmul.mubr.msk.f32.gmra.mrb[20].mxu1 %vm696_vm2, %v3220_v63  ;;  %2696 = vmatmul.mubr.msk.f32.gmra.mrb[22].mxu0 %vm696_vm2, %v1325_v20  ;;  %v1331_v63 = vsel %vm1277_vm4, %v1328_v47, %v1330_v22 }
 0x1bc   : > { %2645 = vmatprep.mubr.msk.f32.mxu1 %vm696_vm2, %v3235_v5  ;;  %2698 = vmatprep.mubr.msk.f32.mxu0 %vm696_vm2, %v1327_v52  ;;  %v1336_v5 = vrot.slane %v3374_v40, 2 }
 0x1be   : > { %v1337_v11 = vsel %vm1277_vm4, %v1334_v27, %v1336_v5 }
 0x1bf   : > { %2646 = vmatmul.mubr.msk.f32.gmra.mrb[22].mxu1 %vm696_vm2, %v3245_v10  ;;  %2699 = vmatmul.mubr.msk.f32.gmra.mrb[24].mxu0 %vm696_vm2, %v1329_v26  ;;  %v1335_v10 = vsel %vm1277_vm4, %v1332_v58, %v1334_v27 }
 0x1c0   : > { %2648 = vmatprep.mubr.msk.f32.mxu1 %vm696_vm2, %v3260_v16  ;;  %2701 = vmatprep.mubr.msk.f32.mxu0 %vm696_vm2, %v1331_v63  ;;  %v1338_v16 = vrot.slane %v3391_v51, 2 }
 0x1c3   : > { %2649 = vmatmul.mubr.msk.f32.gmra.mrb[24].mxu1 %vm696_vm2, %v3270_v23  ;;  %2702 = vmatmul.mubr.msk.f32.gmra.mrb[26].mxu0 %vm696_vm2, %v1333_v24  ;;  %v1339_v23 = vsel %vm1277_vm4, %v1336_v5, %v1338_v16 }
 0x1c4   : > { %2651 = vmatprep.mubr.msk.f32.mxu1 %vm696_vm2, %v3286_v21  ;;  %2704 = vmatprep.mubr.msk.f32.mxu0 %vm696_vm2, %v1335_v10  ;;  %v1345_v21 = vsel %vm1277_vm4, %v1338_v16, %v1309_v54 }
 0x1c7   : > { %2652 = vmatmul.mubr.msk.f32.gmra.mrb[26].mxu1 %vm696_vm2, %v3311_v49  ;;  %2705 = vmatmul.mubr.msk.f32.gmra.mrb[28].mxu0 %vm696_vm2, %v1337_v11 }
 0x1c8   : > { %2654 = vmatprep.mubr.msk.f32.mxu1 %vm696_vm2, %v3334_v2  ;;  %2707 = vmatprep.mubr.msk.f32.mxu0 %vm696_vm2, %v1339_v23 }
 0x1cb   : > { %2655 = vmatmul.mubr.msk.f32.gmra.mrb[28].mxu1 %vm696_vm2, %v3352_v18  ;;  %2708 = vmatmul.mubr.msk.f32.gmra.mrb[30].mxu0 %vm696_vm2, %v1345_v21 }
 0x1cc   : > { %2657 = vmatprep.mubr.msk.f32.mxu1 %vm696_vm2, %v3374_v40 }
 0x1cf   : > { %2658 = vmatmul.mubr.msk.f32.gmra.mrb[30].mxu1 %vm696_vm2, %v3391_v51 }
 0x22d   : > { %v2564_v49 = vpop.f32.mrb[0].mxu1 }
 0x22e   : > { %v829_v29 = vpop.f32.mrb[1].mxu1 }
 0x235   : > { %v2567_v2 = vpop.f32.mrb[2].mxu1 }
 0x236   : > { %v839_v31 = vpop.f32.mrb[3].mxu1 }
 0x23d   : > { %v2570_v14 = vpop.f32.mrb[4].mxu1 }
 0x23e   : > { %v849_v33 = vpop.f32.mrb[5].mxu1 }
 0x245   : > { %v2573_v39 = vpop.f32.mrb[6].mxu1 }
 0x246   : > { %v859_v35 = vpop.f32.mrb[7].mxu1 }
 0x24d   : > { %v2576_v36 = vpop.f32.mrb[8].mxu1 }
 0x24e   : > { %v869_v37 = vpop.f32.mrb[9].mxu1 }
 0x255   : > { %v2579_v19 = vpop.f32.mrb[10].mxu1 }
 0x256   : > { %v3498_v18 = vpop.f32.mrb[11].mxu1 }
 0x25d   : > { %v3500_v43 = vpop.f32.mrb[12].mxu1 }
 0x25e   : > { %v3502_v25 = vpop.f32.mrb[13].mxu1 }
 0x262   : > { %v3504_v40 = vpop.f32.mrb[14].mxu1  ;;  %v2664_v44 = vpop.f32.mrb[0].mxu0 }
 0x263   : > { %v2712_v46 = vadd.f32 %v2664_v44, %v2564_v49  ;;  %v3511_v48 = vpop.f32.mrb[15].mxu1  ;;  %v1478_v50 = vpop.f32.mrb[1].mxu0 }
 0x264   : > { %v2713_v28 = vadd.f32 %v1478_v50, %v829_v29  ;;  %v3563_v44 = vpop.permute.xlu0 %2122 }
 0x265   : > { %v3514_v51 = vadd.f32 %v2712_v46, %v3509_v45 }
 0x266   : > { %v3517_v41 = vadd.f32 %v2713_v28, %v3509_v45  ;;  %v2667_v34 = vpop.f32.mrb[2].mxu0 }
 0x267   : > { %v2424_v54 = vmul.f32 -1.442695, %v3514_v51  ;;  %v2714_v53 = vadd.f32 %v2667_v34, %v2567_v2  ;;  %v1488_v55 = vpop.f32.mrb[3].mxu0 }
 0x268   : > { %v2423_v56 = vmul.f32 -1.442695, %v3517_v41  ;;  %v2715_v57 = vadd.f32 %v1488_v55, %v839_v31 }
 0x269   : > { %2832 = vpow2.f32 %v2424_v54  ;;  %v3522_v59 = vadd.f32 %v2714_v53, %v3509_v45 }
 0x26a   : > { %2834 = vpow2.f32 %v2423_v56  ;;  %v3525_v61 = vadd.f32 %v2715_v57, %v3509_v45  ;;  %v2670_v62 = vpop.f32.mrb[4].mxu0  ;;  %v2128_v56 = vrot.slane %v3563_v44, 1 }
 0x26b   : > { %v2426_v1 = vmul.f32 -1.442695, %v3522_v59  ;;  %v2716_v60 = vadd.f32 %v2670_v62, %v2570_v14  ;;  %v1498_v4 = vpop.f32.mrb[5].mxu0 }
 0x26c   : > { %v2425_v38 = vmul.f32 -1.442695, %v3525_v61  ;;  %v2717_v30 = vadd.f32 %v1498_v4, %v849_v33 }
 0x26d   : > { %2836 = vpow2.f32 %v2426_v1  ;;  %v3530_v0 = vadd.f32 %v2716_v60, %v3509_v45  ;;  %v2129_v1 = vrot.slane %v3563_v44, 2 }
 0x26e   : > { %2838 = vpow2.f32 %v2425_v38  ;;  %v3533_v6 = vadd.f32 %v2717_v30, %v3509_v45  ;;  %v2673_v8 = vpop.f32.mrb[6].mxu0 }
 0x26f   : > { %v2428_v9 = vmul.f32 -1.442695, %v3530_v0  ;;  %v2718_v12 = vadd.f32 %v2673_v8, %v2573_v39  ;;  %v1508_v32 = vpop.f32.mrb[7].mxu0 }
 0x270   : > { %v2427_v13 = vmul.f32 -1.442695, %v3533_v6  ;;  %v2719_v3 = vadd.f32 %v1508_v32, %v859_v35  ;;  %v3558_v35 = vadd.s32 8, %v3144_v17 }
 0x271   : > { %2840 = vpow2.f32 %v2428_v9  ;;  %v3538_v15 = vadd.f32 %v2718_v12, %v3509_v45 }
 0x272   : > { %2842 = vpow2.f32 %v2427_v13  ;;  %v3541_v7 = vadd.f32 %v2719_v3, %v3509_v45  ;;  %v2676_v42 = vpop.f32.mrb[8].mxu0  ;;  %vm1936_vm5 = vcmp.lt.s32.totalorder %v3558_v35, 12 }
 0x273   : > { %v2833_v47 = vpop.eup %2832  ;;  %v2430_v20 = vmul.f32 -1.442695, %v3538_v15  ;;  %v2720_v22 = vadd.f32 %v2676_v42, %v2576_v36  ;;  %v1518_v52 = vpop.f32.mrb[9].mxu0  ;;  %v2130_v42 = vrot.slane %v3563_v44, 3 }
 0x274   : > { %v2835_v58 = vpop.eup %2834  ;;  %v1805_v26 = vadd.f32 1.0, %v2833_v47  ;;  %v2429_v27 = vmul.f32 -1.442695, %v3541_v7  ;;  %v2721_v63 = vadd.f32 %v1518_v52, %v869_v37 }
 0x275   : > { %v1804_v5 = vadd.f32 1.0, %v2835_v58  ;;  %2844 = vpow2.f32 %v2430_v20  ;;  %v3546_v24 = vadd.f32 %v2720_v22, %v3509_v45 }
 0x276   : > { %2846 = vrcp.f32 %v1805_v26  ;;  %v3549_v10 = vadd.f32 %v2721_v63, %v3509_v45  ;;  %v2679_v16 = vpop.f32.mrb[10].mxu0 }
 0x277   : > { %v2837_v11 = vpop.eup %2836  ;;  %2848 = vrcp.f32 %v1804_v5  ;;  %v2432_v23 = vmul.f32 -1.442695, %v3546_v24  ;;  %v2722_v21 = vadd.f32 %v2679_v16, %v2579_v19  ;;  %v1528_v49 = vpop.f32.mrb[11].mxu0 }
 0x278   : > { %v2839_v29 = vpop.eup %2838  ;;  %v1807_v2 = vadd.f32 1.0, %v2837_v11  ;;  %2850 = vpow2.f32 %v2429_v27  ;;  %v2431_v31 = vmul.f32 -1.442695, %v3549_v10  ;;  %v2723_v14 = vadd.f32 %v1528_v49, %v3498_v18 }
 0x279   : > { %v1806_v33 = vadd.f32 1.0, %v2839_v29  ;;  %2852 = vpow2.f32 %v2432_v23  ;;  %v3555_v39 = vadd.f32 %v2722_v21, %v3509_v45  ;;  %v2131_v11 = vrot.slane %v3563_v44, 4 }
 0x27a   : > { %2854 = vrcp.f32 %v1807_v2  ;;  %v3561_v36 = vadd.f32 %v2723_v14, %v3509_v45  ;;  %v2682_v37 = vpop.f32.mrb[12].mxu0  ;;  %v2132_v29 = vrot.slane %v3563_v44, 5  ;;  %v2133_v2 = vrot.slane %v3563_v44, 6 }
 0x27b   : > { %v2841_v19 = vpop.eup %2840  ;;  %2856 = vrcp.f32 %v1806_v33  ;;  %v2434_v46 = vmul.f32 -1.442695, %v3555_v39  ;;  %v2724_v18 = vadd.f32 %v2682_v37, %v3500_v43  ;;  %v1538_v50 = vpop.f32.mrb[13].mxu0 }
 0x27c   : > { %v2843_v28 = vpop.eup %2842  ;;  %v1809_v34 = vadd.f32 1.0, %v2841_v19  ;;  %2858 = vpow2.f32 %v2431_v31  ;;  %v2433_v17 = vmul.f32 -1.442695, %v3561_v36  ;;  %v2725_v54 = vadd.f32 %v1538_v50, %v3502_v25 }
 0x27d   : > { %v1808_v53 = vadd.f32 1.0, %v2843_v28  ;;  %2860 = vpow2.f32 %v2434_v46  ;;  %v3570_v55 = vadd.f32 %v2724_v18, %v3509_v45 }
 0x27e   : > { %2862 = vrcp.f32 %v1809_v34  ;;  %v3575_v43 = vadd.f32 %v2725_v54, %v3509_v45  ;;  %v2685_v57 = vpop.f32.mrb[14].mxu0 }
 0x27f   : > { %v2845_v62 = vpop.eup %2844  ;;  %2864 = vrcp.f32 %v1808_v53  ;;  %v2436_v25 = vmul.f32 -1.442695, %v3570_v55  ;;  %v2726_v60 = vadd.f32 %v2685_v57, %v3504_v40  ;;  %v1548_v4 = vpop.f32.mrb[15].mxu0 }
 0x280   : > { %v2847_v38 = vpop.eup %2846  ;;  %v1811_v30 = vadd.f32 1.0, %v2845_v62  ;;  %2866 = vpow2.f32 %v2433_v17  ;;  %v2435_v8 = vmul.f32 -1.442695, %v3575_v43  ;;  %v2727_v9 = vadd.f32 %v1548_v4, %v3511_v48 }
 0x281   : > { %v2849_v12 = vpop.eup %2848  ;;  %v1901_v32 = vmul.f32 %v2847_v38, %v3514_v51  ;;  %2868 = vpow2.f32 %v2436_v25  ;;  %v3584_v13 = vadd.f32 %v2726_v60, %v3509_v45 }
 0x282   : > { %v2851_v3 = vpop.eup %2850  ;;  %v1900_v40 = vmul.f32 %v2849_v12, %v3517_v41  ;;  %2870 = vrcp.f32 %v1811_v30  ;;  %v3589_v47 = vadd.f32 %v2727_v9, %v3509_v45  ;;  %v2688_v20 = vpop.f32.mrb[16].mxu0 }
 0x283   : > { %v2853_v22 = vpop.eup %2852  ;;  %v1942_v48 = vsel %vm1936_vm5, %v1901_v32, -1e+30  ;;  %v1810_v51 = vadd.f32 1.0, %v2851_v3  ;;  %2872 = vpow2.f32 %v2435_v8  ;;  %v2438_v52 = vmul.f32 -1.442695, %v3584_v13  ;;  %v1558_v58 = vpop.f32.mrb[17].mxu0 }
 0x284   : > { %v2855_v26 = vpop.eup %2854  ;;  %v1975_v27 = vsel %vm1973_vm6, %v1942_v48, -inf  ;;  %v1974_v63 = vsel %vm1973_vm6, %v1900_v40, -inf  ;;  %v1813_v41 = vadd.f32 1.0, %v2853_v22  ;;  %v2437_v5 = vmul.f32 -1.442695, %v3589_v47 }
 0x285   : > { %v2857_v16 = vpop.eup %2856  ;;  %v1976_v23 = vmax.f32 %v1974_v63, %v1975_v27  ;;  %v1903_v21 = vmul.f32 %v2855_v26, %v3522_v59  ;;  %2874 = vrcp.f32 %v1810_v51 }
 0x286   : > { %v2859_v49 = vpop.eup %2858  ;;  %v1902_v31 = vmul.f32 %v2857_v16, %v3525_v61  ;;  %2876 = vrcp.f32 %v1813_v41  ;;  %v2638_v14 = vpop.f32.mrb[16].mxu1 }
 0x287   : > { %v3602_v33 = vpop.f32.mrb[18].mxu0  ;;  %v2861_v37 = vpop.eup %2860  ;;  %v1977_v19 = vrot.slane %v1976_v23, 4  ;;  %v1944_v46 = vsel %vm1936_vm5, %v1903_v21, -1e+30  ;;  %v1812_v18 = vadd.f32 1.0, %v2859_v49  ;;  %2878 = vpow2.f32 %v2438_v52 }
 0x288   : > { %v1198_v59 = vpop.f32.mrb[17].mxu1  ;;  %v3606_v50 = vpop.f32.mrb[19].mxu0  ;;  %v1984_v34 = vsel %vm1973_vm6, %v1944_v46, -inf  ;;  %v1983_v17 = vsel %vm1973_vm6, %v1902_v31, -inf  ;;  %v1815_v61 = vadd.f32 1.0, %v2861_v37  ;;  %2880 = vpow2.f32 %v2437_v5 }
 0x289   : > { %v2863_v28 = vpop.eup %2862  ;;  %v1978_v53 = vmax.f32 %v1976_v23, %v1977_v19  ;;  %v1985_v57 = vmax.f32 %v1983_v17, %v1984_v34  ;;  %2882 = vrcp.f32 %v1812_v18  ;;  %v2728_v4 = vadd.f32 %v2688_v20, %v2638_v14 }
 0x28a   : > { %v2865_v54 = vpop.eup %2864  ;;  %v1905_v62 = vmul.f32 %v2863_v28, %v3530_v0  ;;  %2884 = vrcp.f32 %v1815_v61  ;;  %v2729_v38 = vadd.f32 %v1558_v58, %v1198_v59  ;;  %v2641_v30 = vpop.f32.mrb[18].mxu1 }
 0x28b   : > { %v2867_v25 = vpop.eup %2866  ;;  %v1904_v60 = vmul.f32 %v2865_v54, %v3533_v6  ;;  %v3612_v8 = vpop.f32.mrb[20].mxu0  ;;  %v1979_v12 = vrot.slane %v1978_v53, 2  ;;  %v1986_v32 = vrot.slane %v1985_v57, 4  ;;  %v3621_v20 = vadd.f32 %v2728_v4, %v3509_v45 }
 0x28c   : > { %v2869_v9 = vpop.eup %2868  ;;  %v1946_v3 = vsel %vm1936_vm5, %v1905_v62, -1e+30  ;;  %v1814_v40 = vadd.f32 1.0, %v2867_v25  ;;  %v3616_v22 = vpop.f32.mrb[19].mxu1  ;;  %v3628_v23 = vadd.f32 %v2729_v38, %v3509_v45  ;;  %v2730_v38 = vadd.f32 %v3602_v33, %v2641_v30 }
 0x28d   : > { %v2871_v0 = vpop.eup %2870  ;;  %v1993_v48 = vsel %vm1973_vm6, %v1946_v3, -inf  ;;  %v1992_v6 = vsel %vm1973_vm6, %v1904_v60, -inf  ;;  %v1817_v51 = vadd.f32 1.0, %v2869_v9  ;;  %v3623_v52 = vpop.f32.mrb[21].mxu0  ;;  %v1980_v26 = vmax.f32 %v1978_v53, %v1979_v12 }
 0x28e   : > { %v2873_v58 = vpop.eup %2872  ;;  %v1987_v27 = vmax.f32 %v1985_v57, %v1986_v32  ;;  %v1994_v63 = vmax.f32 %v1992_v6, %v1993_v48  ;;  %v1907_v41 = vmul.f32 %v2871_v0, %v3538_v15  ;;  %2886 = vrcp.f32 %v1814_v40  ;;  %v3630_v21 = vpop.f32.mrb[20].mxu1 }
 0x28f   : > { %v1816_v5 = vadd.f32 1.0, %v2873_v58  ;;  %v2440_v16 = vmul.f32 -1.442695, %v3621_v20  ;;  %v3632_v49 = vpop.f32.mrb[22].mxu0  ;;  %v2875_v31 = vpop.eup %2874  ;;  %v1981_v14 = vrot.slane %v1980_v26, 1  ;;  %2888 = vrcp.f32 %v1817_v51 }
 0x290   : > { %v1988_v37 = vrot.slane %v1987_v27, 2  ;;  %v1995_v19 = vrot.slane %v1994_v63, 4  ;;  %v1948_v46 = vsel %vm1936_vm5, %v1907_v41, -1e+30  ;;  %v3636_v18 = vpop.f32.mrb[21].mxu1  ;;  %v2877_v15 = vpop.eup %2876  ;;  %v1906_v28 = vmul.f32 %v2875_v31, %v3541_v7 }
 0x291   : > { %v2002_v59 = vsel %vm1973_vm6, %v1948_v46, -inf  ;;  %v2439_v34 = vmul.f32 -1.442695, %v3628_v23  ;;  %v3641_v17 = vpop.f32.mrb[23].mxu0  ;;  %v2879_v61 = vpop.eup %2878  ;;  %v1982_v54 = vmax.f32 %v1980_v26, %v1981_v14  ;;  %v1909_v62 = vmul.f32 %v2877_v15, %v3546_v24 }
 0x292   : > { %v1989_v53 = vmax.f32 %v1987_v27, %v1988_v37  ;;  %v1996_v57 = vmax.f32 %v1994_v63, %v1995_v19  ;;  %v2881_v25 = vpop.eup %2880  ;;  %v2001_v60 = vsel %vm1973_vm6, %v1906_v28, -inf  ;;  %2890 = vrcp.f32 %v1816_v5  ;;  %v3646_v9 = vpop.f32.mrb[22].mxu1 }
 0x293   : > { %v1819_v4 = vadd.f32 1.0, %v2879_v61  ;;  %v3648_v7 = vpop.f32.mrb[24].mxu0  ;;  %v2883_v12 = vpop.eup %2882  ;;  %v2158_v32 = vmul.f32 %v3563_v44, %v1982_v54  ;;  %v2003_v0 = vmax.f32 %v2001_v60, %v2002_v59  ;;  %v1950_v51 = vsel %vm1936_vm5, %v1909_v62, -1e+30 }
 0x294   : > { %v1990_v3 = vrot.slane %v1989_v53, 1  ;;  %v1997_v40 = vrot.slane %v1996_v57, 2  ;;  %v3651_v48 = vpop.f32.mrb[23].mxu1  ;;  %v3653_v24 = vpop.f32.mrb[25].mxu0  ;;  %v1908_v33 = vmul.f32 %v2883_v12, %v3549_v10  ;;  %v1818_v30 = vadd.f32 1.0, %v2881_v25 }
 0x295   : > { %v2885_v6 = vpop.eup %2884  ;;  %2892 = vrcp.f32 %v1819_v4  ;;  %v2004_v27 = vrot.slane %v2003_v0, 4  ;;  %v2011_v63 = vsel %vm1973_vm6, %v1950_v51, -inf  ;;  %v3662_v31 = vadd.f32 %v2730_v38, %v3509_v45 }
 0x296   : > { %v1991_v58 = vmax.f32 %v1989_v53, %v1990_v3  ;;  %v1998_v26 = vmax.f32 %v1996_v57, %v1997_v40  ;;  %v2010_v41 = vsel %vm1973_vm6, %v1908_v33, -inf  ;;  %v1911_v5 = vmul.f32 %v2885_v6, %v3555_v39  ;;  %v3664_v14 = vpop.f32.mrb[24].mxu1  ;;  %v3666_v37 = vpop.f32.mrb[26].mxu0 }
 0x297   : > { %2894 = vrcp.f32 %v1818_v30  ;;  %v2005_v46 = vmax.f32 %v2003_v0, %v2004_v27  ;;  %v2012_v15 = vmax.f32 %v2010_v41, %v2011_v63  ;;  %v3670_v59 = vpop.f32.mrb[25].mxu1  ;;  %v3672_v28 = vpop.f32.mrb[27].mxu0  ;;  %v2442_v54 = vmul.f32 -1.442695, %v3662_v31 }
 0x298   : > { %v2159_v10 = vmul.f32 %v2128_v56, %v1991_v58  ;;  %v1999_v19 = vrot.slane %v1998_v26, 1  ;;  %v2887_v61 = vpop.eup %2886  ;;  %v1952_v39 = vsel %vm1936_vm5, %v1911_v5, -1e+30  ;;  %2896 = vpow2.f32 %v2440_v16 }
 0x299   : > { %v2731_v53 = vadd.f32 %v3606_v50, %v3616_v22  ;;  %v2006_v56 = vrot.slane %v2005_v46, 2  ;;  %v2013_v25 = vrot.slane %v2012_v15, 4  ;;  %v2889_v60 = vpop.eup %2888  ;;  %v2020_v4 = vsel %vm1973_vm6, %v1952_v39, -inf }
 0x29a   : > { %v2190_v57 = vrot.slane %v2159_v10, 7  ;;  %v2000_v62 = vmax.f32 %v1998_v26, %v1999_v19  ;;  %v1910_v38 = vmul.f32 %v2887_v61, %v3561_v36  ;;  %2898 = vpow2.f32 %v2439_v34  ;;  %v3684_v16 = vpop.f32.mrb[26].mxu1  ;;  %v3686_v3 = vpop.f32.mrb[28].mxu0 }
 0x29b   : > { %v3682_v12 = vadd.f32 %v2731_v53, %v3509_v45  ;;  %v2007_v40 = vmax.f32 %v2005_v46, %v2006_v56  ;;  %v2014_v0 = vmax.f32 %v2012_v15, %v2013_v25  ;;  %v3691_v6 = vpop.f32.mrb[27].mxu1  ;;  %v3693_v51 = vpop.f32.mrb[29].mxu0  ;;  %v1913_v33 = vmul.f32 %v2889_v60, %v3570_v55 }
 0x29c   : > { %v2191_v50 = vsel %vm323_vm1, %v2190_v57, %v2158_v32  ;;  %v2160_v22 = vmul.f32 %v2129_v1, %v2000_v62  ;;  %v2891_v36 = vpop.eup %2890  ;;  %v2019_v34 = vsel %vm1973_vm6, %v1910_v38, -inf  ;;  %2900 = vpow2.f32 %v2442_v54 }
 0x29d   : > { %v2441_v30 = vmul.f32 -1.442695, %v3682_v12  ;;  %v2008_v26 = vrot.slane %v2007_v40, 1  ;;  %v2015_v32 = vrot.slane %v2014_v0, 2  ;;  %v2021_v27 = vmax.f32 %v2019_v34, %v2020_v4 }
 0x29e   : > { %v2192_v58 = vrot.slane %v2160_v22, 6  ;;  %v1954_v1 = vsel %vm1936_vm5, %v1913_v33, -1e+30  ;;  %v1912_v41 = vmul.f32 %v2891_v36, %v3575_v43  ;;  %v2732_v5 = vadd.f32 %v3612_v8, %v3630_v21  ;;  %v3703_v10 = vpop.f32.mrb[28].mxu1  ;;  %v3705_v55 = vpop.f32.mrb[30].mxu0 }
 0x29f   : > { %v2893_v63 = vpop.eup %2892  ;;  %2902 = vpow2.f32 %v2441_v30  ;;  %v2009_v46 = vmax.f32 %v2007_v40, %v2008_v26  ;;  %v2016_v15 = vmax.f32 %v2014_v0, %v2015_v32  ;;  %v2022_v61 = vrot.slane %v2021_v27, 4  ;;  %v3708_v39 = vpop.f32.mrb[29].mxu1 }
 0x2a0   : > { %v2193_v19 = vsel %vm370_vm0, %v2192_v58, %v2191_v50  ;;  %v3710_v54 = vpop.f32.mrb[31].mxu0  ;;  %v2029_v43 = vsel %vm1973_vm6, %v1954_v1, -inf  ;;  %v2028_v57 = vsel %vm1973_vm6, %v1912_v41, -inf  ;;  %v1915_v8 = vmul.f32 %v2893_v63, %v3584_v13 }
 0x2a1   : > { %v2895_v53 = vpop.eup %2894  ;;  %v3716_v21 = vadd.f32 %v2732_v5, %v3509_v45  ;;  %v2161_v62 = vmul.f32 %v2130_v42, %v2009_v46  ;;  %v2017_v56 = vrot.slane %v2016_v15, 1  ;;  %v2023_v25 = vmax.f32 %v2021_v27, %v2022_v61 }
 0x2a2   : > { %v2030_v60 = vmax.f32 %v2028_v57, %v2029_v43  ;;  %v2897_v4 = vpop.eup %2896  ;;  %v1956_v38 = vsel %vm1936_vm5, %v1915_v8, -1e+30  ;;  %v1914_v50 = vmul.f32 %v2895_v53, %v3589_v47  ;;  %v2733_v13 = vadd.f32 %v3623_v52, %v3636_v18  ;;  %v3726_v40 = vpop.f32.mrb[30].mxu1 }
 0x2a3   : > { %v2444_v22 = vmul.f32 -1.442695, %v3716_v21  ;;  %v2194_v0 = vrot.slane %v2161_v62, 5  ;;  %v2018_v36 = vmax.f32 %v2016_v15, %v2017_v56  ;;  %v2024_v34 = vrot.slane %v2023_v25, 2  ;;  %v3728_v33 = vpop.f32.mrb[31].mxu1 }
 0x2a4   : > { %v2031_v42 = vrot.slane %v2030_v60, 4  ;;  %v2899_v30 = vpop.eup %2898  ;;  %v2038_v58 = vsel %vm1973_vm6, %v1956_v38, -inf  ;;  %v2037_v26 = vsel %vm1973_vm6, %v1914_v50, -inf  ;;  %v1821_v32 = vadd.f32 1.0, %v2897_v4 }
 0x2a5   : > { %2904 = vpow2.f32 %v2444_v22  ;;  %v2196_v47 = vsel %vm2195_vm7, %v2194_v0, %v2193_v19  ;;  %v2162_v52 = vmul.f32 %v2131_v11, %v2018_v36  ;;  %v2025_v18 = vmax.f32 %v2023_v25, %v2024_v34 }
 0x2a6   : > { %v2032_v27 = vmax.f32 %v2030_v60, %v2031_v42  ;;  %v2901_v63 = vpop.eup %2900  ;;  %v2039_v1 = vmax.f32 %v2037_v26, %v2038_v58  ;;  %2906 = vrcp.f32 %v1821_v32  ;;  %v1820_v41 = vadd.f32 1.0, %v2899_v30 }
 0x2a7   : > { %v3736_v5 = vadd.f32 %v2733_v13, %v3509_v45  ;;  %v2197_v46 = vrot.slane %v2162_v52, 4  ;;  %v2026_v15 = vrot.slane %v2025_v18, 1  ;;  %v1823_v53 = vadd.f32 1.0, %v2901_v63 }
 0x2a8   : > { %v2033_v61 = vrot.slane %v2032_v27, 2  ;;  %v2040_v57 = vrot.slane %v2039_v1, 4  ;;  %2908 = vrcp.f32 %v1820_v41  ;;  %v2734_v11 = vadd.f32 %v3632_v49, %v3646_v9 }
 0x2a9   : > { %v2903_v43 = vpop.eup %2902  ;;  %v2443_v19 = vmul.f32 -1.442695, %v3736_v5  ;;  %v3742_v8 = vsel %vm2198_vm8, %v2197_v46, %v2196_v47  ;;  %v2027_v62 = vmax.f32 %v2025_v18, %v2026_v15  ;;  %2910 = vrcp.f32 %v1823_v53 }
 0x2aa   : > { %v2034_v56 = vmax.f32 %v2032_v27, %v2033_v61  ;;  %v2041_v25 = vmax.f32 %v2039_v1, %v2040_v57  ;;  %v1822_v60 = vadd.f32 1.0, %v2903_v43  ;;  %v3745_v4 = vadd.f32 %v2734_v11, %v3509_v45 }
 0x2ab   : > { %2912 = vpow2.f32 %v2443_v19  ;;  %v2134_v38 = vrot.slane %v3563_v44, 7  ;;  %v2735_v22 = vadd.f32 %v3641_v17, %v3651_v48  ;;  %v2736_v49 = vadd.f32 %v3648_v7, %v3664_v14 }
 0x2ac   : > { %v2035_v50 = vrot.slane %v2034_v56, 1  ;;  %v2042_v9 = vrot.slane %v2041_v25, 2  ;;  %2914 = vrcp.f32 %v1822_v60  ;;  %v2446_v13 = vmul.f32 -1.442695, %v3745_v4 }
 0x2ad   : > { %v2737_v0 = vadd.f32 %v3653_v24, %v3670_v59  ;;  %v3757_v36 = vmul.f32 %v2132_v29, %v2027_v62  ;;  %v3760_v42 = vadd.f32 %v2735_v22, %v3509_v45  ;;  %v3763_v17 = vadd.f32 %v2736_v49, %v3509_v45 }
 0x2ae   : > { %v2036_v34 = vmax.f32 %v2034_v56, %v2035_v50  ;;  %v2043_v7 = vmax.f32 %v2041_v25, %v2042_v9  ;;  %2916 = vpow2.f32 %v2446_v13  ;;  %v2738_v24 = vadd.f32 %v3666_v37, %v3684_v16 }
 0x2af   : > { %v2905_v48 = vpop.eup %2904  ;;  %v3766_v14 = vadd.f32 %v2737_v0, %v3509_v45  ;;  %v2445_v30 = vmul.f32 -1.442695, %v3760_v42  ;;  %v2448_v58 = vmul.f32 -1.442695, %v3763_v17  ;;  %v2739_v18 = vadd.f32 %v3672_v28, %v3691_v6 }
 0x2b0   : > { %v3772_v29 = vmul.f32 %v2133_v2, %v2036_v34  ;;  %v1825_v59 = vadd.f32 1.0, %v2905_v48  ;;  %v2907_v26 = vpop.eup %2906  ;;  %v2044_v32 = vrot.slane %v2043_v7, 1  ;;  %v3778_v52 = vadd.f32 %v2738_v24, %v3509_v45 }
 0x2b1   : > { %v2447_v47 = vmul.f32 -1.442695, %v3766_v14  ;;  %v2200_v44 = vrot.slane %v3757_v36, 3  ;;  %v1917_v2 = vmul.f32 %v2907_v26, %v3621_v20  ;;  %v2740_v37 = vadd.f32 %v3686_v3, %v3703_v10 }
 0x2b2   : > { %2918 = vrcp.f32 %v1825_v59  ;;  %v2909_v16 = vpop.eup %2908  ;;  %v2045_v27 = vmax.f32 %v2043_v7, %v2044_v32  ;;  %v2450_v63 = vmul.f32 -1.442695, %v3778_v52  ;;  %v3788_v1 = vadd.f32 %v2739_v18, %v3509_v45 }
 0x2b3   : > { %2920 = vpow2.f32 %v2445_v30  ;;  %v2911_v41 = vpop.eup %2910  ;;  %v1958_v28 = vsel %vm1936_vm5, %v1917_v2, -1e+30  ;;  %v1916_v6 = vmul.f32 %v2909_v16, %v3628_v23  ;;  %v3794_v20 = vadd.f32 %v2740_v37, %v3509_v45 }
 0x2b4   : > { %2922 = vpow2.f32 %v2448_v58  ;;  %v2203_v3 = vrot.slane %v3772_v29, 2  ;;  %v2047_v10 = vsel %vm1973_vm6, %v1958_v28, -inf  ;;  %v1919_v15 = vmul.f32 %v2911_v41, %v3662_v31 }
 0x2b5   : > { %v2913_v46 = vpop.eup %2912  ;;  %2924 = vpow2.f32 %v2447_v47  ;;  %v2046_v61 = vsel %vm1973_vm6, %v1916_v6, -inf  ;;  %v2449_v43 = vmul.f32 -1.442695, %v3788_v1  ;;  %v2165_v57 = vmul.f32 %v2134_v38, %v2045_v27 }
 0x2b6   : > { %v1824_v53 = vadd.f32 1.0, %v2913_v46  ;;  %2926 = vpow2.f32 %v2450_v63  ;;  %v2915_v23 = vpop.eup %2914  ;;  %v2048_v19 = vmax.f32 %v2046_v61, %v2047_v10  ;;  %v1960_v11 = vsel %vm1936_vm5, %v1919_v15, -1e+30  ;;  %v3840_v46 = vpop.permute.xlu1 %2126 }
 0x2b7   : > { %v2452_v62 = vmul.f32 -1.442695, %v3794_v20  ;;  %v2056_v56 = vsel %vm1973_vm6, %v1960_v11, -inf  ;;  %v1918_v25 = vmul.f32 %v2915_v23, %v3682_v12  ;;  %v2741_v31 = vadd.f32 %v3693_v51, %v3708_v39 }
 0x2b8   : > { %2928 = vrcp.f32 %v1824_v53  ;;  %v2917_v60 = vpop.eup %2916  ;;  %v2049_v50 = vrot.slane %v2048_v19, 4  ;;  %v2742_v38 = vadd.f32 %v3705_v55, %v3726_v40  ;;  %v2743_v22 = vadd.f32 %v3710_v54, %v3728_v33 }
 0x2b9   : > { %2930 = vpow2.f32 %v2449_v43  ;;  %v2055_v49 = vsel %vm1973_vm6, %v1918_v25, -inf  ;;  %v1827_v9 = vadd.f32 1.0, %v2917_v60  ;;  %v3815_v12 = vadd.f32 %v2741_v31, %v3509_v45 }
 0x2ba   : > { %2932 = vpow2.f32 %v2452_v62  ;;  %v2206_v13 = vrot.slane %v2165_v57, 1  ;;  %v2050_v0 = vmax.f32 %v2048_v19, %v2049_v50  ;;  %v2057_v51 = vmax.f32 %v2055_v49, %v2056_v56 }
 0x2bb   : > { %2934 = vrcp.f32 %v1827_v9  ;;  %v2451_v55 = vmul.f32 -1.442695, %v3815_v12  ;;  %v3821_v40 = vadd.f32 %v2742_v38, %v3509_v45  ;;  %v2202_v54 = vsel %vm2201_vm9, %v2200_v44, %v3742_v8 }
 0x2bc   : > { %v2919_v39 = vpop.eup %2918  ;;  %v2051_v36 = vrot.slane %v2050_v0, 2  ;;  %v2058_v34 = vrot.slane %v2057_v51, 4  ;;  %v3827_v29 = vadd.f32 %v2743_v22, %v3509_v45  ;;  %v2205_v59 = vsel %vm2204_vm10, %v2203_v3, %v2202_v54 }
 0x2bd   : > { %v2921_v33 = vpop.eup %2920  ;;  %v1921_v48 = vmul.f32 %v2919_v39, %v3716_v21  ;;  %2936 = vpow2.f32 %v2451_v55  ;;  %v2454_v21 = vmul.f32 -1.442695, %v3821_v40  ;;  %v2208_v44 = vsel %vm2207_vm11, %v2206_v13, %v2205_v59 }
 0x2be   : > { %v2923_v7 = vpop.eup %2922  ;;  %v1826_v24 = vadd.f32 1.0, %v2921_v33  ;;  %v2052_v58 = vmax.f32 %v2050_v0, %v2051_v36  ;;  %v2059_v26 = vmax.f32 %v2057_v51, %v2058_v34  ;;  %2225 = vst.msk [vmem:[%s3834_s15] sm:$0xff] %vm1973_vm6, %v2208_v44  ;;  %v2453_v10 = vmul.f32 -1.442695, %v3827_v29 }
 0x2bf   : > { %v2925_v30 = vpop.eup %2924  ;;  %v1962_v8 = vsel %vm1936_vm5, %v1921_v48, -1e+30  ;;  %v1829_v32 = vadd.f32 1.0, %v2923_v7  ;;  %v2135_v19 = vrot.slane %v3840_v46, 1 }
 0x2c0   : > { %v2927_v47 = vpop.eup %2926  ;;  %2938 = vrcp.f32 %v1826_v24  ;;  %v1828_v18 = vadd.f32 1.0, %v2925_v30  ;;  %v2060_v2 = vrot.slane %v2059_v26, 2  ;;  %v2053_v16 = vrot.slane %v2052_v58, 1 }
 0x2c1   : > { %2940 = vrcp.f32 %v1829_v32  ;;  %v1831_v45 = vadd.f32 1.0, %v2927_v47  ;;  %v2065_v41 = vsel %vm1973_vm6, %v1962_v8, -inf }
 0x2c2   : > { %v2929_v37 = vpop.eup %2928  ;;  %2942 = vrcp.f32 %v1828_v18  ;;  %v2061_v63 = vmax.f32 %v2059_v26, %v2060_v2  ;;  %v2054_v23 = vmax.f32 %v2052_v58, %v2053_v16  ;;  %v2136_v18 = vrot.slane %v3840_v46, 2 }
 0x2c3   : > { %v2931_v27 = vpop.eup %2930  ;;  %v1920_v28 = vmul.f32 %v2929_v37, %v3736_v5  ;;  %2944 = vrcp.f32 %v1831_v45 }
 0x2c4   : > { %v2933_v6 = vpop.eup %2932  ;;  %v1830_v3 = vadd.f32 1.0, %v2931_v27  ;;  %2946 = vpow2.f32 %v2454_v21  ;;  %v2062_v15 = vrot.slane %v2061_v63, 1  ;;  %v2166_v38 = vmul.f32 %v3840_v46, %v2054_v23 }
 0x2c5   : > { %v2064_v61 = vsel %vm1973_vm6, %v1920_v28, -inf  ;;  %v1833_v53 = vadd.f32 1.0, %v2933_v6  ;;  %v2935_v43 = vpop.eup %2934 }
 0x2c6   : > { %v2066_v57 = vmax.f32 %v2064_v61, %v2065_v41  ;;  %2948 = vrcp.f32 %v1830_v3  ;;  %v2063_v11 = vmax.f32 %v2061_v63, %v2062_v15  ;;  %v1923_v5 = vmul.f32 %v2935_v43, %v3745_v4 }
 0x2c7   : > { %2950 = vrcp.f32 %v1833_v53  ;;  %v2937_v62 = vpop.eup %2936 }
 0x2c8   : > { %v2067_v56 = vrot.slane %v2066_v57, 4  ;;  %2952 = vpow2.f32 %v2453_v10  ;;  %v2167_v25 = vmul.f32 %v2135_v19, %v2063_v11  ;;  %v1964_v31 = vsel %vm1936_vm5, %v1923_v5, -1e+30 }
 0x2c9   : > { %v1832_v60 = vadd.f32 1.0, %v2937_v62  ;;  %v2074_v13 = vsel %vm1973_vm6, %v1964_v31, -inf  ;;  %v2137_v62 = vrot.slane %v3840_v46, 3 }
 0x2ca   : > { %v2939_v50 = vpop.eup %2938  ;;  %v2068_v22 = vmax.f32 %v2066_v57, %v2067_v56  ;;  %v2209_v9 = vrot.slane %v2167_v25, 7 }
 0x2cb   : > { %v2941_v49 = vpop.eup %2940  ;;  %v1922_v0 = vmul.f32 %v2939_v50, %v3760_v42  ;;  %2954 = vrcp.f32 %v1832_v60 }
 0x2cc   : > { %v2943_v4 = vpop.eup %2942  ;;  %v2069_v51 = vrot.slane %v2068_v22, 2  ;;  %v1925_v39 = vmul.f32 %v2941_v49, %v3763_v17  ;;  %v2210_v54 = vsel %vm323_vm1, %v2209_v9, %v2166_v38 }
 0x2cd   : > { %v2945_v55 = vpop.eup %2944  ;;  %v2073_v33 = vsel %vm1973_vm6, %v1922_v0, -inf  ;;  %v1924_v36 = vmul.f32 %v2943_v4, %v3766_v14 }
 0x2ce   : > { %v2947_v34 = vpop.eup %2946  ;;  %v2070_v48 = vmax.f32 %v2068_v22, %v2069_v51  ;;  %v2075_v7 = vmax.f32 %v2073_v33, %v2074_v13  ;;  %v1966_v24 = vsel %vm1936_vm5, %v1925_v39, -1e+30  ;;  %v1927_v42 = vmul.f32 %v2945_v55, %v3778_v52 }
 0x2cf   : > { %v2083_v59 = vsel %vm1973_vm6, %v1966_v24, -inf  ;;  %v2082_v30 = vsel %vm1973_vm6, %v1924_v36, -inf  ;;  %v1835_v17 = vadd.f32 1.0, %v2947_v34  ;;  %v2138_v22 = vrot.slane %v3840_v46, 4 }
 0x2d0   : > { %v2949_v58 = vpop.eup %2948  ;;  %v2071_v26 = vrot.slane %v2070_v48, 1  ;;  %v2076_v8 = vrot.slane %v2075_v7, 4  ;;  %v2084_v32 = vmax.f32 %v2082_v30, %v2083_v59  ;;  %v1968_v14 = vsel %vm1936_vm5, %v1927_v42, -1e+30 }
 0x2d1   : > { %v2951_v47 = vpop.eup %2950  ;;  %v2092_v21 = vsel %vm1973_vm6, %v1968_v14, -inf  ;;  %v1926_v44 = vmul.f32 %v2949_v58, %v3788_v1  ;;  %2956 = vrcp.f32 %v1835_v17  ;;  %v2139_v33 = vrot.slane %v3840_v46, 5 }
 0x2d2   : > { %v2953_v52 = vpop.eup %2952  ;;  %v2072_v2 = vmax.f32 %v2070_v48, %v2071_v26  ;;  %v2077_v45 = vmax.f32 %v2075_v7, %v2076_v8  ;;  %v2085_v37 = vrot.slane %v2084_v32, 4  ;;  %v1929_v16 = vmul.f32 %v2951_v47, %v3794_v20 }
 0x2d3   : > { %v2091_v27 = vsel %vm1973_vm6, %v1926_v44, -inf  ;;  %v1834_v63 = vadd.f32 1.0, %v2953_v52 }
 0x2d4   : > { %v2168_v41 = vmul.f32 %v2136_v18, %v2072_v2  ;;  %v2078_v28 = vrot.slane %v2077_v45, 2  ;;  %v2086_v6 = vmax.f32 %v2084_v32, %v2085_v37  ;;  %v2093_v3 = vmax.f32 %v2091_v27, %v2092_v21 }
 0x2d5   : > { %v2955_v10 = vpop.eup %2954  ;;  %v1970_v15 = vsel %vm1936_vm5, %v1929_v16, -1e+30  ;;  %2958 = vrcp.f32 %v1834_v63  ;;  %v2140_v32 = vrot.slane %v3840_v46, 6  ;;  %v2141_v16 = vrot.slane %v3840_v46, 7 }
 0x2d6   : > { %v2211_v1 = vrot.slane %v2168_v41, 6  ;;  %v2079_v61 = vmax.f32 %v2077_v45, %v2078_v28  ;;  %v2087_v53 = vrot.slane %v2086_v6, 2  ;;  %v2094_v43 = vrot.slane %v2093_v3, 4 }
 0x2d7   : > { %v2101_v23 = vsel %vm1973_vm6, %v1970_v15, -inf  ;;  %v1928_v20 = vmul.f32 %v2955_v10, %v3815_v12 }
 0x2d8   : > { %v2212_v57 = vsel %vm370_vm0, %v2211_v1, %v2210_v54  ;;  %v2080_v19 = vrot.slane %v2079_v61, 1  ;;  %v2088_v11 = vmax.f32 %v2086_v6, %v2087_v53  ;;  %v2095_v5 = vmax.f32 %v2093_v3, %v2094_v43 }
 0x2d9   : > { %v2100_v56 = vsel %vm1973_vm6, %v1928_v20, -inf }
 0x2da   : > { %v2081_v25 = vmax.f32 %v2079_v61, %v2080_v19  ;;  %v2089_v31 = vrot.slane %v2088_v11, 1  ;;  %v2096_v60 = vrot.slane %v2095_v5, 2  ;;  %v2102_v50 = vmax.f32 %v2100_v56, %v2101_v23 }
 0x2db   : > { %v2957_v38 = vpop.eup %2956 }
 0x2dc   : > { %v2169_v49 = vmul.f32 %v2137_v62, %v2081_v25  ;;  %v2090_v9 = vmax.f32 %v2088_v11, %v2089_v31  ;;  %v2097_v13 = vmax.f32 %v2095_v5, %v2096_v60  ;;  %v2103_v12 = vrot.slane %v2102_v50, 4 }
 0x2dd   : > { %v1931_v0 = vmul.f32 %v2957_v38, %v3821_v40 }
 0x2de   : > { %v2213_v4 = vrot.slane %v2169_v49, 5  ;;  %v2170_v51 = vmul.f32 %v2138_v22, %v2090_v9  ;;  %v2098_v39 = vrot.slane %v2097_v13, 1  ;;  %v2104_v55 = vmax.f32 %v2102_v50, %v2103_v12 }
 0x2df   : > { %v2959_v54 = vpop.eup %2958  ;;  %v1972_v36 = vsel %vm1936_vm5, %v1931_v0, -1e+30 }
 0x2e0   : > { %v2214_v34 = vsel %vm2195_vm7, %v2213_v4, %v2212_v57  ;;  %v2215_v48 = vrot.slane %v2170_v51, 4  ;;  %v2099_v7 = vmax.f32 %v2097_v13, %v2098_v39  ;;  %v2105_v24 = vrot.slane %v2104_v55, 2 }
 0x2e1   : > { %v2110_v42 = vsel %vm1973_vm6, %v1972_v36, -inf  ;;  %v1930_v59 = vmul.f32 %v2959_v54, %v3827_v29 }
 0x2e2   : > { %v2216_v40 = vsel %vm2198_vm8, %v2215_v48, %v2214_v34  ;;  %v2171_v30 = vmul.f32 %v2139_v33, %v2099_v7  ;;  %v2106_v17 = vmax.f32 %v2104_v55, %v2105_v24 }
 0x2e3   : > { %v2109_v58 = vsel %vm1973_vm6, %v1930_v59, -inf }
 0x2e4   : > { %v2217_v26 = vrot.slane %v2171_v30, 3  ;;  %v2107_v8 = vrot.slane %v2106_v17, 1  ;;  %v2111_v35 = vmax.f32 %v2109_v58, %v2110_v42 }
 0x2e6   : > { %v2108_v14 = vmax.f32 %v2106_v17, %v2107_v8  ;;  %v2112_v47 = vrot.slane %v2111_v35, 4  ;;  %v2218_v18 = vsel %vm2201_vm9, %v2217_v26, %v2216_v40 }
 0x2e8   : > { %v2172_v21 = vmul.f32 %v2140_v32, %v2108_v14  ;;  %v2113_v29 = vmax.f32 %v2111_v35, %v2112_v47 }
 0x2ea   : > { %v2219_v44 = vrot.slane %v2172_v21, 2  ;;  %v2114_v52 = vrot.slane %v2113_v29, 2 }
 0x2ec   : > { %v2115_v2 = vmax.f32 %v2113_v29, %v2114_v52  ;;  %v2220_v45 = vsel %vm2204_vm10, %v2219_v44, %v2218_v18 }
 0x2ee   : > { %v2116_v37 = vrot.slane %v2115_v2, 1 }
 0x2f0   : > { %v2117_v27 = vmax.f32 %v2115_v2, %v2116_v37 }
 0x2f2   : > { %v2173_v63 = vmul.f32 %v2141_v16, %v2117_v27 }
 0x2f4   : > { %v2221_v41 = vrot.slane %v2173_v63, 1 }
 0x2f6   : > { %v2222_v28 = vsel %vm2207_vm11, %v2221_v41, %v2220_v45 }
 0x2f7   : > { %2226 = vst.msk [vmem:[%s3834_s15 + $0x8] sm:$0xff] %vm1973_vm6, %v2222_v28 }
 0x2f8   : > { %2973 = shalt.err (!%p2970_p3)
}
 0x2f9   : > { %s2974_s10 = scalar_lea.hbm %s3893_s20, 256  ;;  %s2978_s12 = scalar_lea.hbm %s3949_s6, 512 }
 0x2fa   : > { %p2975_p4 = scmp.ne.s32.totalorder %s3893_s20, %s2974_s10  ;;  %p2979_p9 = scmp.lt.u32.totalorder %s3893_s20, %s3949_s6 }
 0x2fb   : > { %p2980_p10 = scmp.lt.u32.totalorder %s2978_s12, %s2974_s10  ;;  %p2982_p12 = scmp.lt.u32.totalorder %s2974_s10, %s3893_s20 }
 0x2fc   : > { %p2976_p7 = pnand %p2975_p4, %p3104_p5 }
 0x2fd   : > { %p2981_p11 = por %p2980_p10, %p2979_p9 }
 0x2fe   : > { %p2977_p8 = pneg %p2976_p7 }
 0x2ff   : > { %p2983_p13 = por %p2982_p12, %p2981_p11 }
 0x301   : > { %p2984_p0 = pnand %p2983_p13, %p2977_p8 }
 0x303   : > { %2987 = shalt.err (!%p2984_p0)
}
 0x304   : > { %s3029_s16 = smov 128   ;;  %s3030_s18 = smov 8  }
 0x305   : > { %2776 = dma.vmem_to_hbm [thread:$0]  (%p3104_p5), %s3895_s17, 256, %s3893_s20, %s3902_s26, %s3029_s16, %s3029_s16, %s3030_s18  }
 0x306 PF: > { %p2782_p1 = scmp.ge.s32.totalorder %s3022_s24, 2  ;;  %s2256_s19 = sand.u32 1, %s3010_s21  }
 0x307   : > { %s2257_s25 = scalar_lea.sflag [#allocation3], %s2256_s19 }
 0x308   : > { %p2779_p2 = pnand %p2782_p1, %p3108_p6 }
 0x30a   : > { %3005 = dma.done.wait (!%p2779_p2), %s2257_s25, 256  }
 0x30b   : > { %3007 = vsyncadd (!%p2779_p2), %s2257_s25, 4294967040  ;;  %p16_p3 = scmp.ge.s32.totalorder %s3091_s27, 4   ;;  %s3952_s21 = smov %s3014_s22 }
 0x30c   : > { %s3953_s22 = smov %s3018_s23  ;;  %s3954_s23 = smov %s3102_s30 }
 0x30d   : > { %s3955_s24 = smov %s3091_s27  ;;  %18 = sbr.rel (!%p16_p3) target bundleno = 3 (0x3), region = 82 }
 0x314   :  { %2262 = vsyncpa [#allocation3], 1 }
 0x315   :  { %2264 = vsyncpa [#allocation3 + $0x1], 1 }

</bundles_post_ra>
